<compile_context>
chip_gen: v7x
topology: tpu7x:2x2x1
jax: 0.10.0
libtpu: 0.0.40
codegen_flags: <defaults>
</compile_context>

<pallas_src>
import jax
import jax.numpy as jnp
from jax import lax
from jax.experimental import pallas as pl
from jax.experimental.pallas import tpu as pltpu

EPS = 1e-5


def _conv_bn_relu(slab_ref, w_ref, g_ref, b_ref, n, h, w, c_out):
    """One Conv3x3(bias-free) + BatchNorm2d(train) + ReLU on a lane-dense slab.

    slab_ref: (n, h+2, w*c_in) bf16  row-padded activation (halo rows zero)
    w_ref:    (3, w*c_in, w*c_out) bf16 banded-Toeplitz weights (one per dy)
    g_ref/b_ref: (1, c_out) f32 BN affine params
    returns:  (n*h, w*c_out) f32 activation (lane layout = (x, c) interleaved)
    """
    rows = n * h
    k = slab_ref.shape[-1]

    # 3 accumulating MXU matmuls (one per kernel row); dx taps + x-padding are
    # inside the band structure of w_ref[dy].  bf16 in, f32 accumulate.
    acc = None
    for dy in range(3):
        a = slab_ref[:, dy:dy + h, :].reshape(rows, k)          # bf16, lane-dense
        p = jnp.dot(a, w_ref[dy], preferred_element_type=jnp.float32)
        acc = p if acc is None else acc + p                     # (rows, w*c_out) f32

    # BatchNorm2d, training mode (biased batch variance over N*H*W), single
    # pass: per-lane sum and sum-of-squares, then fold the W x-groups that are
    # interleaved in the lane dim down to per-channel stats (tiny, unrolled).
    inv_cnt = 1.0 / float(rows * w)
    s_l = jnp.sum(acc, axis=0, keepdims=True)                   # (1, w*c_out)
    ss_l = jnp.sum(acc * acc, axis=0, keepdims=True)            # (1, w*c_out)
    s_c = jnp.zeros((1, c_out), jnp.float32)
    ss_c = jnp.zeros((1, c_out), jnp.float32)
    for x in range(w):
        s_c = s_c + s_l[:, x * c_out:(x + 1) * c_out]
        ss_c = ss_c + ss_l[:, x * c_out:(x + 1) * c_out]
    mean = s_c * inv_cnt
    var = ss_c * inv_cnt - mean * mean
    scale = g_ref[...] * lax.rsqrt(var + EPS)                   # (1, c_out)
    shift = b_ref[...] - mean * scale

    # Broadcast the per-channel affine back over the (x, c) interleaved lanes
    # and apply the fused FMA + ReLU.
    scale_l = jnp.concatenate([scale] * w, axis=1)              # (1, w*c_out)
    shift_l = jnp.concatenate([shift] * w, axis=1)
    return jnp.maximum(acc * scale_l + shift_l, 0.0)


def _double_conv_kernel(x_ref, w1_ref, g1_ref, b1_ref, w2_ref, g2_ref, b2_ref,
                        out_ref, xrow_sc, hrow_sc):
    # x_ref:   (N, H, W*Cin)  f32   input as a lane-dense NHWC slab
    # w1_ref:  (3, W*Cin, W*Cmid)  bf16  banded-Toeplitz conv1 weights
    # w2_ref:  (3, W*Cmid, W*Cout) bf16  banded-Toeplitz conv2 weights
    # g*/b*:   (1, C)  f32   BN gamma/beta
    # out_ref: (N*H, W*Cout) f32   lane-dense output slab (contiguous NHWC)
    # xrow_sc: (N, H+2, W*Cin)  bf16  row-padded input slab (scratch)
    # hrow_sc: (N, H+2, W*Cmid) bf16  row-padded intermediate slab (scratch)
    N, H, _ = x_ref.shape
    c_mid = g1_ref.shape[-1]
    c_out = g2_ref.shape[-1]
    W = hrow_sc.shape[-1] // c_mid

    # ---- layer 1: zero only the 1-row halo, write the interior once ---------
    zrow1 = jnp.zeros((N, 1, xrow_sc.shape[-1]), xrow_sc.dtype)
    xrow_sc[:, 0:1, :] = zrow1
    xrow_sc[:, H + 1:H + 2, :] = zrow1
    xrow_sc[:, 1:H + 1, :] = x_ref[...].astype(xrow_sc.dtype)

    h1 = _conv_bn_relu(xrow_sc, w1_ref, g1_ref, b1_ref, N, H, W, c_mid)

    # ---- layer 2: intermediate never leaves VMEM (stored bf16) --------------
    zrow2 = jnp.zeros((N, 1, hrow_sc.shape[-1]), hrow_sc.dtype)
    hrow_sc[:, 0:1, :] = zrow2
    hrow_sc[:, H + 1:H + 2, :] = zrow2
    hrow_sc[:, 1:H + 1, :] = h1.reshape(N, H, W * c_mid).astype(hrow_sc.dtype)

    y = _conv_bn_relu(hrow_sc, w2_ref, g2_ref, b2_ref, N, H, W, c_out)

    # ---- single full-width, lane-dense store (W*Cout is a multiple of 128) --
    out_ref[...] = y


def _band_weights(w_hwio, W):
    """Fold the 3 dx taps and the x zero-padding of a 3x3 conv into 3 banded
    matrices B[dy] of shape (W*Cin, W*Cout):
        B[dy][xx*Cin+ci, x*Cout+co] = w[dy, xx-x+1, ci, co]  if |xx-x| <= 1.
    Then conv(x)[n,h,x,co] = sum_dy (rowpad(x)[n, h+dy, :] @ B[dy])[x*Cout+co].
    """
    kh, kw, cin, cout = w_hwio.shape
    xx = jnp.arange(W)[:, None]
    x = jnp.arange(W)[None, :]
    d = xx - x + 1                                    # (W, W)
    mask = ((d >= 0) & (d < kw)).astype(w_hwio.dtype)
    dd = jnp.clip(d, 0, kw - 1)

    def one(dy):
        t = w_hwio[dy][dd] * mask[..., None, None]    # (W, W, cin, cout)
        return t.transpose(0, 2, 1, 3).reshape(W * cin, W * cout)

    return jnp.stack([one(dy) for dy in range(kh)])   # (3, W*cin, W*cout)


def double_conv(x_nchw, params):
    """DoubleConv.forward: NCHW in, NCHW out (matches the PyTorch module)."""
    w1, g1, b1, w2, g2, b2 = params                   # conv weights in HWIO layout
    N, c_in, H, W = x_nchw.shape
    c_mid = w1.shape[-1]
    c_out = w2.shape[-1]

    # NCHW -> NHWC, then fold (W, C) into the lane dim (free contiguous reshape).
    x = jnp.transpose(x_nchw, (0, 2, 3, 1)).astype(jnp.float32)
    x = x.reshape(N, H, W * c_in)

    # Banded-Toeplitz conv weights (weight prep, done once), bf16 MXU operands.
    wb1 = _band_weights(w1.astype(jnp.float32), W).astype(jnp.bfloat16)
    wb2 = _band_weights(w2.astype(jnp.float32), W).astype(jnp.bfloat16)

    # Explicit VMEM budget from the actual footprint (+ headroom for layout
    # padding / temporaries); everything here is tiny so the floor dominates.
    est_bytes = (x.size * 4
                 + wb1.size * 2 + wb2.size * 2
                 + (N * H) * (W * c_out) * 4
                 + N * (H + 2) * W * (c_in + c_mid) * 2)
    vmem_limit = int(max(4 * est_bytes, 8 * 1024 * 1024))

    vmem = pl.BlockSpec(memory_space=pltpu.MemorySpace.VMEM)

    slab = pl.pallas_call(
        _double_conv_kernel,
        out_shape=jax.ShapeDtypeStruct((N * H, W * c_out), jnp.float32),
        in_specs=[vmem] * 7,
        out_specs=vmem,
        scratch_shapes=[
            pltpu.VMEM((N, H + 2, W * c_in), jnp.bfloat16),    # row-padded input
            pltpu.VMEM((N, H + 2, W * c_mid), jnp.bfloat16),   # row-padded intermediate
        ],
        compiler_params=pltpu.CompilerParams(vmem_limit_bytes=vmem_limit),
    )(x, wb1,
      g1.reshape(1, c_mid).astype(jnp.float32),
      b1.reshape(1, c_mid).astype(jnp.float32),
      wb2,
      g2.reshape(1, c_out).astype(jnp.float32),
      b2.reshape(1, c_out).astype(jnp.float32))

    # The slab is exactly contiguous NHWC, so this reshape is free metadata.
    y_nhwc = slab.reshape(N, H, W, c_out)
    return jnp.transpose(y_nhwc, (0, 3, 1, 2))        # NHWC -> NCHW


# ---- pure-JAX reference for a correctness sanity check -----------------------
def _ref_conv_bn_relu(x_nhwc, w_hwio, gamma, beta):
    y = lax.conv_general_dilated(
        x_nhwc, w_hwio, window_strides=(1, 1), padding="SAME",
        dimension_numbers=("NHWC", "HWIO", "NHWC"),
        precision=lax.Precision.HIGHEST)
    mean = jnp.mean(y, axis=(0, 1, 2), keepdims=True)
    var = jnp.mean((y - mean) ** 2, axis=(0, 1, 2), keepdims=True)
    y = (y - mean) * lax.rsqrt(var + EPS) * gamma + beta
    return jnp.maximum(y, 0.0)


if __name__ == "__main__":
    N, Cin, Cout, H, W = 2, 4, 8, 16, 16

    key = jax.random.PRNGKey(0)
    kx, k1, k2 = jax.random.split(key, 3)

    x = jax.random.normal(kx, (N, Cin, H, W), jnp.float32)   # NCHW like PyTorch

    # Conv weights generated directly in HWIO layout (a PyTorch OIHW weight of
    # shape (Cout, Cin, 3, 3) would be transposed with (2, 3, 1, 0)).
    w1 = jax.random.normal(k1, (3, 3, Cin, Cout), jnp.float32) * 0.1
    w2 = jax.random.normal(k2, (3, 3, Cout, Cout), jnp.float32) * 0.1
    # BatchNorm2d default init: weight=1, bias=0.
    g1 = jnp.ones((Cout,), jnp.float32)
    b1 = jnp.zeros((Cout,), jnp.float32)
    g2 = jnp.ones((Cout,), jnp.float32)
    b2 = jnp.zeros((Cout,), jnp.float32)

    out = double_conv(x, (w1, g1, b1, w2, g2, b2))
    out = jax.block_until_ready(out)

    # Sanity check against an all-f32 reference.  The kernel uses bf16 MXU
    # operands with f32 accumulation (per the perf review), so the tolerance is
    # set at the ~1e-2 level appropriate for bf16-vs-f32 over two conv layers.
    xr = jnp.transpose(x, (0, 2, 3, 1))
    hr = _ref_conv_bn_relu(xr, w1, g1, b1)
    yr = _ref_conv_bn_relu(hr, w2, g2, b2)
    ref = jnp.transpose(yr, (0, 3, 1, 2))

    assert out.shape == (N, Cout, H, W)
    err = float(jnp.max(jnp.abs(out - ref)))
    assert jnp.allclose(out, ref, rtol=3e-2, atol=3e-2), f"max abs err {err}"

    print("KERNEL_OK")
</pallas_src>

<mosaic_0001>
module attributes {stable_mosaic.version = 11 : i64} {
  func.func @_double_conv_kernel(%arg0: memref<2x16x64xf32, #tpu.memory_space<vmem>>, %arg1: memref<3x64x128xbf16, #tpu.memory_space<vmem>>, %arg2: memref<1x8xf32, #tpu.memory_space<vmem>>, %arg3: memref<1x8xf32, #tpu.memory_space<vmem>>, %arg4: memref<3x128x128xbf16, #tpu.memory_space<vmem>>, %arg5: memref<1x8xf32, #tpu.memory_space<vmem>>, %arg6: memref<1x8xf32, #tpu.memory_space<vmem>>, %arg7: memref<32x128xf32, #tpu.memory_space<vmem>>, %arg8: memref<2x18x64xbf16, #tpu.memory_space<vmem>>, %arg9: memref<2x18x128xbf16, #tpu.memory_space<vmem>>) attributes {dimension_semantics = [], scalar_prefetch = 0 : i64, scratch_operands = 2 : i64, tpu.core_type = #tpu.core_type<tc>} {
    %cst = arith.constant 0.000000e+00 : bf16
    %0 = vector.broadcast %cst : bf16 to vector<2x1x64xbf16>
    %c0 = arith.constant 0 : index
    %c0_0 = arith.constant 0 : index
    %c0_1 = arith.constant 0 : index
    %1 = vector.load %arg8[%c0, %c0_0, %c0_1] : memref<2x18x64xbf16, #tpu.memory_space<vmem>>, vector<2x1x64xbf16>
    tpu.vector_store %arg8[%c0, %c0_0, %c0_1], %0 {strides = array<i32>} : memref<2x18x64xbf16, #tpu.memory_space<vmem>>, vector<2x1x64xbf16>,
    %c0_2 = arith.constant 0 : index
    %c17 = arith.constant 17 : index
    %c0_3 = arith.constant 0 : index
    %2 = vector.load %arg8[%c0_2, %c17, %c0_3] : memref<2x18x64xbf16, #tpu.memory_space<vmem>>, vector<2x1x64xbf16>
    tpu.vector_store %arg8[%c0_2, %c17, %c0_3], %0 {strides = array<i32>} : memref<2x18x64xbf16, #tpu.memory_space<vmem>>, vector<2x1x64xbf16>,
    %c0_4 = arith.constant 0 : index
    %c0_5 = arith.constant 0 : index
    %c0_6 = arith.constant 0 : index
    %3 = vector.load %arg0[%c0_4, %c0_5, %c0_6] : memref<2x16x64xf32, #tpu.memory_space<vmem>>, vector<2x16x64xf32>
    %4 = arith.truncf %3 : vector<2x16x64xf32> to vector<2x16x64xbf16>
    %c0_7 = arith.constant 0 : index
    %c1 = arith.constant 1 : index
    %c0_8 = arith.constant 0 : index
    %5 = vector.load %arg8[%c0_7, %c1, %c0_8] : memref<2x18x64xbf16, #tpu.memory_space<vmem>>, vector<2x16x64xbf16>
    tpu.vector_store %arg8[%c0_7, %c1, %c0_8], %4 {strides = array<i32>} : memref<2x18x64xbf16, #tpu.memory_space<vmem>>, vector<2x16x64xbf16>,
    %c0_9 = arith.constant 0 : index
    %c0_10 = arith.constant 0 : index
    %c0_11 = arith.constant 0 : index
    %6 = vector.load %arg8[%c0_9, %c0_10, %c0_11] : memref<2x18x64xbf16, #tpu.memory_space<vmem>>, vector<2x16x64xbf16>
    %7 = vector.shape_cast %6 : vector<2x16x64xbf16> to vector<32x64xbf16>
    %c0_12 = arith.constant 0 : index
    %c0_13 = arith.constant 0 : index
    %c0_14 = arith.constant 0 : index
    %8 = vector.load %arg1[%c0_12, %c0_13, %c0_14] : memref<3x64x128xbf16, #tpu.memory_space<vmem>>, vector<1x64x128xbf16>
    %9 = vector.shape_cast %8 : vector<1x64x128xbf16> to vector<64x128xbf16>
    %cst_15 = arith.constant dense<0.000000e+00> : vector<32x128xf32>
    %10 = tpu.matmul %7, %9, %cst_15 {dimension_numbers = #tpu.dot_dimension_numbers<[1], [0], [0], [1], [0, 0, 1, 1], [], []>} : vector<32x64xbf16>, vector<64x128xbf16>, vector<32x128xf32> -> vector<32x128xf32>
    %c0_16 = arith.constant 0 : index
    %c1_17 = arith.constant 1 : index
    %c0_18 = arith.constant 0 : index
    %11 = vector.load %arg8[%c0_16, %c1_17, %c0_18] : memref<2x18x64xbf16, #tpu.memory_space<vmem>>, vector<2x16x64xbf16>
    %12 = vector.shape_cast %11 : vector<2x16x64xbf16> to vector<32x64xbf16>
    %c1_19 = arith.constant 1 : index
    %c0_20 = arith.constant 0 : index
    %c0_21 = arith.constant 0 : index
    %13 = vector.load %arg1[%c1_19, %c0_20, %c0_21] : memref<3x64x128xbf16, #tpu.memory_space<vmem>>, vector<1x64x128xbf16>
    %14 = vector.shape_cast %13 : vector<1x64x128xbf16> to vector<64x128xbf16>
    %cst_22 = arith.constant dense<0.000000e+00> : vector<32x128xf32>
    %15 = tpu.matmul %12, %14, %cst_22 {dimension_numbers = #tpu.dot_dimension_numbers<[1], [0], [0], [1], [0, 0, 1, 1], [], []>} : vector<32x64xbf16>, vector<64x128xbf16>, vector<32x128xf32> -> vector<32x128xf32>
    %16 = arith.addf %10, %15 : vector<32x128xf32>
    %c0_23 = arith.constant 0 : index
    %c2 = arith.constant 2 : index
    %c0_24 = arith.constant 0 : index
    %17 = vector.load %arg8[%c0_23, %c2, %c0_24] : memref<2x18x64xbf16, #tpu.memory_space<vmem>>, vector<2x16x64xbf16>
    %18 = vector.shape_cast %17 : vector<2x16x64xbf16> to vector<32x64xbf16>
    %c2_25 = arith.constant 2 : index
    %c0_26 = arith.constant 0 : index
    %c0_27 = arith.constant 0 : index
    %19 = vector.load %arg1[%c2_25, %c0_26, %c0_27] : memref<3x64x128xbf16, #tpu.memory_space<vmem>>, vector<1x64x128xbf16>
    %20 = vector.shape_cast %19 : vector<1x64x128xbf16> to vector<64x128xbf16>
    %cst_28 = arith.constant dense<0.000000e+00> : vector<32x128xf32>
    %21 = tpu.matmul %18, %20, %cst_28 {dimension_numbers = #tpu.dot_dimension_numbers<[1], [0], [0], [1], [0, 0, 1, 1], [], []>} : vector<32x64xbf16>, vector<64x128xbf16>, vector<32x128xf32> -> vector<32x128xf32>
    %22 = arith.addf %16, %21 : vector<32x128xf32>
    %cst_29 = arith.constant dense<0.000000e+00> : vector<128xf32>
    %23 = vector.multi_reduction <add>, %22, %cst_29 [0] : vector<32x128xf32> to vector<128xf32>
    %24 = vector.shape_cast %23 : vector<128xf32> to vector<1x128xf32>
    %25 = arith.mulf %22, %22 : vector<32x128xf32>
    %cst_30 = arith.constant dense<0.000000e+00> : vector<128xf32>
    %26 = vector.multi_reduction <add>, %25, %cst_30 [0] : vector<32x128xf32> to vector<128xf32>
    %27 = vector.shape_cast %26 : vector<128xf32> to vector<1x128xf32>
    %cst_31 = arith.constant 0.000000e+00 : f32
    %28 = vector.broadcast %cst_31 : f32 to vector<1x8xf32>
    %cst_32 = arith.constant 0.000000e+00 : f32
    %29 = vector.broadcast %cst_32 : f32 to vector<1x8xf32>
    %30 = vector.extract_strided_slice %24 {offsets = [0, 0], sizes = [1, 8], strides = [1, 1]} : vector<1x128xf32> to vector<1x8xf32>
    %31 = arith.addf %28, %30 : vector<1x8xf32>
    %32 = vector.extract_strided_slice %27 {offsets = [0, 0], sizes = [1, 8], strides = [1, 1]} : vector<1x128xf32> to vector<1x8xf32>
    %33 = arith.addf %29, %32 : vector<1x8xf32>
    %34 = vector.extract_strided_slice %24 {offsets = [0, 8], sizes = [1, 8], strides = [1, 1]} : vector<1x128xf32> to vector<1x8xf32>
    %35 = arith.addf %31, %34 : vector<1x8xf32>
    %36 = vector.extract_strided_slice %27 {offsets = [0, 8], sizes = [1, 8], strides = [1, 1]} : vector<1x128xf32> to vector<1x8xf32>
    %37 = arith.addf %33, %36 : vector<1x8xf32>
    %38 = vector.extract_strided_slice %24 {offsets = [0, 16], sizes = [1, 8], strides = [1, 1]} : vector<1x128xf32> to vector<1x8xf32>
    %39 = arith.addf %35, %38 : vector<1x8xf32>
    %40 = vector.extract_strided_slice %27 {offsets = [0, 16], sizes = [1, 8], strides = [1, 1]} : vector<1x128xf32> to vector<1x8xf32>
    %41 = arith.addf %37, %40 : vector<1x8xf32>
    %42 = vector.extract_strided_slice %24 {offsets = [0, 24], sizes = [1, 8], strides = [1, 1]} : vector<1x128xf32> to vector<1x8xf32>
    %43 = arith.addf %39, %42 : vector<1x8xf32>
    %44 = vector.extract_strided_slice %27 {offsets = [0, 24], sizes = [1, 8], strides = [1, 1]} : vector<1x128xf32> to vector<1x8xf32>
    %45 = arith.addf %41, %44 : vector<1x8xf32>
    %46 = vector.extract_strided_slice %24 {offsets = [0, 32], sizes = [1, 8], strides = [1, 1]} : vector<1x128xf32> to vector<1x8xf32>
    %47 = arith.addf %43, %46 : vector<1x8xf32>
    %48 = vector.extract_strided_slice %27 {offsets = [0, 32], sizes = [1, 8], strides = [1, 1]} : vector<1x128xf32> to vector<1x8xf32>
    %49 = arith.addf %45, %48 : vector<1x8xf32>
    %50 = vector.extract_strided_slice %24 {offsets = [0, 40], sizes = [1, 8], strides = [1, 1]} : vector<1x128xf32> to vector<1x8xf32>
    %51 = arith.addf %47, %50 : vector<1x8xf32>
    %52 = vector.extract_strided_slice %27 {offsets = [0, 40], sizes = [1, 8], strides = [1, 1]} : vector<1x128xf32> to vector<1x8xf32>
    %53 = arith.addf %49, %52 : vector<1x8xf32>
    %54 = vector.extract_strided_slice %24 {offsets = [0, 48], sizes = [1, 8], strides = [1, 1]} : vector<1x128xf32> to vector<1x8xf32>
    %55 = arith.addf %51, %54 : vector<1x8xf32>
    %56 = vector.extract_strided_slice %27 {offsets = [0, 48], sizes = [1, 8], strides = [1, 1]} : vector<1x128xf32> to vector<1x8xf32>
    %57 = arith.addf %53, %56 : vector<1x8xf32>
    %58 = vector.extract_strided_slice %24 {offsets = [0, 56], sizes = [1, 8], strides = [1, 1]} : vector<1x128xf32> to vector<1x8xf32>
    %59 = arith.addf %55, %58 : vector<1x8xf32>
    %60 = vector.extract_strided_slice %27 {offsets = [0, 56], sizes = [1, 8], strides = [1, 1]} : vector<1x128xf32> to vector<1x8xf32>
    %61 = arith.addf %57, %60 : vector<1x8xf32>
    %62 = vector.extract_strided_slice %24 {offsets = [0, 64], sizes = [1, 8], strides = [1, 1]} : vector<1x128xf32> to vector<1x8xf32>
    %63 = arith.addf %59, %62 : vector<1x8xf32>
    %64 = vector.extract_strided_slice %27 {offsets = [0, 64], sizes = [1, 8], strides = [1, 1]} : vector<1x128xf32> to vector<1x8xf32>
    %65 = arith.addf %61, %64 : vector<1x8xf32>
    %66 = vector.extract_strided_slice %24 {offsets = [0, 72], sizes = [1, 8], strides = [1, 1]} : vector<1x128xf32> to vector<1x8xf32>
    %67 = arith.addf %63, %66 : vector<1x8xf32>
    %68 = vector.extract_strided_slice %27 {offsets = [0, 72], sizes = [1, 8], strides = [1, 1]} : vector<1x128xf32> to vector<1x8xf32>
    %69 = arith.addf %65, %68 : vector<1x8xf32>
    %70 = vector.extract_strided_slice %24 {offsets = [0, 80], sizes = [1, 8], strides = [1, 1]} : vector<1x128xf32> to vector<1x8xf32>
    %71 = arith.addf %67, %70 : vector<1x8xf32>
    %72 = vector.extract_strided_slice %27 {offsets = [0, 80], sizes = [1, 8], strides = [1, 1]} : vector<1x128xf32> to vector<1x8xf32>
    %73 = arith.addf %69, %72 : vector<1x8xf32>
    %74 = vector.extract_strided_slice %24 {offsets = [0, 88], sizes = [1, 8], strides = [1, 1]} : vector<1x128xf32> to vector<1x8xf32>
    %75 = arith.addf %71, %74 : vector<1x8xf32>
    %76 = vector.extract_strided_slice %27 {offsets = [0, 88], sizes = [1, 8], strides = [1, 1]} : vector<1x128xf32> to vector<1x8xf32>
    %77 = arith.addf %73, %76 : vector<1x8xf32>
    %78 = vector.extract_strided_slice %24 {offsets = [0, 96], sizes = [1, 8], strides = [1, 1]} : vector<1x128xf32> to vector<1x8xf32>
    %79 = arith.addf %75, %78 : vector<1x8xf32>
    %80 = vector.extract_strided_slice %27 {offsets = [0, 96], sizes = [1, 8], strides = [1, 1]} : vector<1x128xf32> to vector<1x8xf32>
    %81 = arith.addf %77, %80 : vector<1x8xf32>
    %82 = vector.extract_strided_slice %24 {offsets = [0, 104], sizes = [1, 8], strides = [1, 1]} : vector<1x128xf32> to vector<1x8xf32>
    %83 = arith.addf %79, %82 : vector<1x8xf32>
    %84 = vector.extract_strided_slice %27 {offsets = [0, 104], sizes = [1, 8], strides = [1, 1]} : vector<1x128xf32> to vector<1x8xf32>
    %85 = arith.addf %81, %84 : vector<1x8xf32>
    %86 = vector.extract_strided_slice %24 {offsets = [0, 112], sizes = [1, 8], strides = [1, 1]} : vector<1x128xf32> to vector<1x8xf32>
    %87 = arith.addf %83, %86 : vector<1x8xf32>
    %88 = vector.extract_strided_slice %27 {offsets = [0, 112], sizes = [1, 8], strides = [1, 1]} : vector<1x128xf32> to vector<1x8xf32>
    %89 = arith.addf %85, %88 : vector<1x8xf32>
    %90 = vector.extract_strided_slice %24 {offsets = [0, 120], sizes = [1, 8], strides = [1, 1]} : vector<1x128xf32> to vector<1x8xf32>
    %91 = arith.addf %87, %90 : vector<1x8xf32>
    %92 = vector.extract_strided_slice %27 {offsets = [0, 120], sizes = [1, 8], strides = [1, 1]} : vector<1x128xf32> to vector<1x8xf32>
    %93 = arith.addf %89, %92 : vector<1x8xf32>
    %cst_33 = arith.constant 0.001953125 : f32
    %94 = vector.broadcast %cst_33 : f32 to vector<1x8xf32>
    %95 = arith.mulf %91, %94 : vector<1x8xf32>
    %cst_34 = arith.constant 0.001953125 : f32
    %96 = vector.broadcast %cst_34 : f32 to vector<1x8xf32>
    %97 = arith.mulf %93, %96 : vector<1x8xf32>
    %98 = arith.mulf %95, %95 : vector<1x8xf32>
    %99 = arith.subf %97, %98 : vector<1x8xf32>
    %c0_35 = arith.constant 0 : index
    %c0_36 = arith.constant 0 : index
    %100 = vector.load %arg2[%c0_35, %c0_36] : memref<1x8xf32, #tpu.memory_space<vmem>>, vector<1x8xf32>
    %cst_37 = arith.constant 9.99999974E-6 : f32
    %101 = vector.broadcast %cst_37 : f32 to vector<1x8xf32>
    %102 = arith.addf %99, %101 : vector<1x8xf32>
    %103 = math.rsqrt %102 : vector<1x8xf32>
    %104 = arith.mulf %100, %103 : vector<1x8xf32>
    %c0_38 = arith.constant 0 : index
    %c0_39 = arith.constant 0 : index
    %105 = vector.load %arg3[%c0_38, %c0_39] : memref<1x8xf32, #tpu.memory_space<vmem>>, vector<1x8xf32>
    %106 = arith.mulf %95, %104 : vector<1x8xf32>
    %107 = arith.subf %105, %106 : vector<1x8xf32>
    %108 = tpu.concatenate %104, %104, %104, %104, %104, %104, %104, %104, %104, %104, %104, %104, %104, %104, %104, %104 in 1 : vector<1x8xf32>, vector<1x8xf32>, vector<1x8xf32>, vector<1x8xf32>, vector<1x8xf32>, vector<1x8xf32>, vector<1x8xf32>, vector<1x8xf32>, vector<1x8xf32>, vector<1x8xf32>, vector<1x8xf32>, vector<1x8xf32>, vector<1x8xf32>, vector<1x8xf32>, vector<1x8xf32>, vector<1x8xf32> -> vector<1x128xf32>
    %109 = tpu.concatenate %107, %107, %107, %107, %107, %107, %107, %107, %107, %107, %107, %107, %107, %107, %107, %107 in 1 : vector<1x8xf32>, vector<1x8xf32>, vector<1x8xf32>, vector<1x8xf32>, vector<1x8xf32>, vector<1x8xf32>, vector<1x8xf32>, vector<1x8xf32>, vector<1x8xf32>, vector<1x8xf32>, vector<1x8xf32>, vector<1x8xf32>, vector<1x8xf32>, vector<1x8xf32>, vector<1x8xf32>, vector<1x8xf32> -> vector<1x128xf32>
    %110 = vector.broadcast %108 : vector<1x128xf32> to vector<32x128xf32>
    %111 = arith.mulf %22, %110 : vector<32x128xf32>
    %112 = vector.broadcast %109 : vector<1x128xf32> to vector<32x128xf32>
    %113 = arith.addf %111, %112 : vector<32x128xf32>
    %cst_40 = arith.constant 0.000000e+00 : f32
    %114 = vector.broadcast %cst_40 : f32 to vector<32x128xf32>
    %115 = arith.maximumf %113, %114 : vector<32x128xf32>
    %cst_41 = arith.constant 0.000000e+00 : bf16
    %116 = vector.broadcast %cst_41 : bf16 to vector<2x1x128xbf16>
    %c0_42 = arith.constant 0 : index
    %c0_43 = arith.constant 0 : index
    %c0_44 = arith.constant 0 : index
    %117 = vector.load %arg9[%c0_42, %c0_43, %c0_44] : memref<2x18x128xbf16, #tpu.memory_space<vmem>>, vector<2x1x128xbf16>
    tpu.vector_store %arg9[%c0_42, %c0_43, %c0_44], %116 {strides = array<i32>} : memref<2x18x128xbf16, #tpu.memory_space<vmem>>, vector<2x1x128xbf16>,
    %c0_45 = arith.constant 0 : index
    %c17_46 = arith.constant 17 : index
    %c0_47 = arith.constant 0 : index
    %118 = vector.load %arg9[%c0_45, %c17_46, %c0_47] : memref<2x18x128xbf16, #tpu.memory_space<vmem>>, vector<2x1x128xbf16>
    tpu.vector_store %arg9[%c0_45, %c17_46, %c0_47], %116 {strides = array<i32>} : memref<2x18x128xbf16, #tpu.memory_space<vmem>>, vector<2x1x128xbf16>,
    %119 = vector.shape_cast %115 : vector<32x128xf32> to vector<2x16x128xf32>
    %120 = arith.truncf %119 : vector<2x16x128xf32> to vector<2x16x128xbf16>
    %c0_48 = arith.constant 0 : index
    %c1_49 = arith.constant 1 : index
    %c0_50 = arith.constant 0 : index
    %121 = vector.load %arg9[%c0_48, %c1_49, %c0_50] : memref<2x18x128xbf16, #tpu.memory_space<vmem>>, vector<2x16x128xbf16>
    tpu.vector_store %arg9[%c0_48, %c1_49, %c0_50], %120 {strides = array<i32>} : memref<2x18x128xbf16, #tpu.memory_space<vmem>>, vector<2x16x128xbf16>,
    %c0_51 = arith.constant 0 : index
    %c0_52 = arith.constant 0 : index
    %c0_53 = arith.constant 0 : index
    %122 = vector.load %arg9[%c0_51, %c0_52, %c0_53] : memref<2x18x128xbf16, #tpu.memory_space<vmem>>, vector<2x16x128xbf16>
    %123 = vector.shape_cast %122 : vector<2x16x128xbf16> to vector<32x128xbf16>
    %c0_54 = arith.constant 0 : index
    %c0_55 = arith.constant 0 : index
    %c0_56 = arith.constant 0 : index
    %124 = vector.load %arg4[%c0_54, %c0_55, %c0_56] : memref<3x128x128xbf16, #tpu.memory_space<vmem>>, vector<1x128x128xbf16>
    %125 = vector.shape_cast %124 : vector<1x128x128xbf16> to vector<128x128xbf16>
    %cst_57 = arith.constant dense<0.000000e+00> : vector<32x128xf32>
    %126 = tpu.matmul %123, %125, %cst_57 {dimension_numbers = #tpu.dot_dimension_numbers<[1], [0], [0], [1], [0, 0, 1, 1], [], []>} : vector<32x128xbf16>, vector<128x128xbf16>, vector<32x128xf32> -> vector<32x128xf32>
    %c0_58 = arith.constant 0 : index
    %c1_59 = arith.constant 1 : index
    %c0_60 = arith.constant 0 : index
    %127 = vector.load %arg9[%c0_58, %c1_59, %c0_60] : memref<2x18x128xbf16, #tpu.memory_space<vmem>>, vector<2x16x128xbf16>
    %128 = vector.shape_cast %127 : vector<2x16x128xbf16> to vector<32x128xbf16>
    %c1_61 = arith.constant 1 : index
    %c0_62 = arith.constant 0 : index
    %c0_63 = arith.constant 0 : index
    %129 = vector.load %arg4[%c1_61, %c0_62, %c0_63] : memref<3x128x128xbf16, #tpu.memory_space<vmem>>, vector<1x128x128xbf16>
    %130 = vector.shape_cast %129 : vector<1x128x128xbf16> to vector<128x128xbf16>
    %cst_64 = arith.constant dense<0.000000e+00> : vector<32x128xf32>
    %131 = tpu.matmul %128, %130, %cst_64 {dimension_numbers = #tpu.dot_dimension_numbers<[1], [0], [0], [1], [0, 0, 1, 1], [], []>} : vector<32x128xbf16>, vector<128x128xbf16>, vector<32x128xf32> -> vector<32x128xf32>
    %132 = arith.addf %126, %131 : vector<32x128xf32>
    %c0_65 = arith.constant 0 : index
    %c2_66 = arith.constant 2 : index
    %c0_67 = arith.constant 0 : index
    %133 = vector.load %arg9[%c0_65, %c2_66, %c0_67] : memref<2x18x128xbf16, #tpu.memory_space<vmem>>, vector<2x16x128xbf16>
    %134 = vector.shape_cast %133 : vector<2x16x128xbf16> to vector<32x128xbf16>
    %c2_68 = arith.constant 2 : index
    %c0_69 = arith.constant 0 : index
    %c0_70 = arith.constant 0 : index
    %135 = vector.load %arg4[%c2_68, %c0_69, %c0_70] : memref<3x128x128xbf16, #tpu.memory_space<vmem>>, vector<1x128x128xbf16>
    %136 = vector.shape_cast %135 : vector<1x128x128xbf16> to vector<128x128xbf16>
    %cst_71 = arith.constant dense<0.000000e+00> : vector<32x128xf32>
    %137 = tpu.matmul %134, %136, %cst_71 {dimension_numbers = #tpu.dot_dimension_numbers<[1], [0], [0], [1], [0, 0, 1, 1], [], []>} : vector<32x128xbf16>, vector<128x128xbf16>, vector<32x128xf32> -> vector<32x128xf32>
    %138 = arith.addf %132, %137 : vector<32x128xf32>
    %cst_72 = arith.constant dense<0.000000e+00> : vector<128xf32>
    %139 = vector.multi_reduction <add>, %138, %cst_72 [0] : vector<32x128xf32> to vector<128xf32>
    %140 = vector.shape_cast %139 : vector<128xf32> to vector<1x128xf32>
    %141 = arith.mulf %138, %138 : vector<32x128xf32>
    %cst_73 = arith.constant dense<0.000000e+00> : vector<128xf32>
    %142 = vector.multi_reduction <add>, %141, %cst_73 [0] : vector<32x128xf32> to vector<128xf32>
    %143 = vector.shape_cast %142 : vector<128xf32> to vector<1x128xf32>
    %cst_74 = arith.constant 0.000000e+00 : f32
    %144 = vector.broadcast %cst_74 : f32 to vector<1x8xf32>
    %cst_75 = arith.constant 0.000000e+00 : f32
    %145 = vector.broadcast %cst_75 : f32 to vector<1x8xf32>
    %146 = vector.extract_strided_slice %140 {offsets = [0, 0], sizes = [1, 8], strides = [1, 1]} : vector<1x128xf32> to vector<1x8xf32>
    %147 = arith.addf %144, %146 : vector<1x8xf32>
    %148 = vector.extract_strided_slice %143 {offsets = [0, 0], sizes = [1, 8], strides = [1, 1]} : vector<1x128xf32> to vector<1x8xf32>
    %149 = arith.addf %145, %148 : vector<1x8xf32>
    %150 = vector.extract_strided_slice %140 {offsets = [0, 8], sizes = [1, 8], strides = [1, 1]} : vector<1x128xf32> to vector<1x8xf32>
    %151 = arith.addf %147, %150 : vector<1x8xf32>
    %152 = vector.extract_strided_slice %143 {offsets = [0, 8], sizes = [1, 8], strides = [1, 1]} : vector<1x128xf32> to vector<1x8xf32>
    %153 = arith.addf %149, %152 : vector<1x8xf32>
    %154 = vector.extract_strided_slice %140 {offsets = [0, 16], sizes = [1, 8], strides = [1, 1]} : vector<1x128xf32> to vector<1x8xf32>
    %155 = arith.addf %151, %154 : vector<1x8xf32>
    %156 = vector.extract_strided_slice %143 {offsets = [0, 16], sizes = [1, 8], strides = [1, 1]} : vector<1x128xf32> to vector<1x8xf32>
    %157 = arith.addf %153, %156 : vector<1x8xf32>
    %158 = vector.extract_strided_slice %140 {offsets = [0, 24], sizes = [1, 8], strides = [1, 1]} : vector<1x128xf32> to vector<1x8xf32>
    %159 = arith.addf %155, %158 : vector<1x8xf32>
    %160 = vector.extract_strided_slice %143 {offsets = [0, 24], sizes = [1, 8], strides = [1, 1]} : vector<1x128xf32> to vector<1x8xf32>
    %161 = arith.addf %157, %160 : vector<1x8xf32>
    %162 = vector.extract_strided_slice %140 {offsets = [0, 32], sizes = [1, 8], strides = [1, 1]} : vector<1x128xf32> to vector<1x8xf32>
    %163 = arith.addf %159, %162 : vector<1x8xf32>
    %164 = vector.extract_strided_slice %143 {offsets = [0, 32], sizes = [1, 8], strides = [1, 1]} : vector<1x128xf32> to vector<1x8xf32>
    %165 = arith.addf %161, %164 : vector<1x8xf32>
    %166 = vector.extract_strided_slice %140 {offsets = [0, 40], sizes = [1, 8], strides = [1, 1]} : vector<1x128xf32> to vector<1x8xf32>
    %167 = arith.addf %163, %166 : vector<1x8xf32>
    %168 = vector.extract_strided_slice %143 {offsets = [0, 40], sizes = [1, 8], strides = [1, 1]} : vector<1x128xf32> to vector<1x8xf32>
    %169 = arith.addf %165, %168 : vector<1x8xf32>
    %170 = vector.extract_strided_slice %140 {offsets = [0, 48], sizes = [1, 8], strides = [1, 1]} : vector<1x128xf32> to vector<1x8xf32>
    %171 = arith.addf %167, %170 : vector<1x8xf32>
    %172 = vector.extract_strided_slice %143 {offsets = [0, 48], sizes = [1, 8], strides = [1, 1]} : vector<1x128xf32> to vector<1x8xf32>
    %173 = arith.addf %169, %172 : vector<1x8xf32>
    %174 = vector.extract_strided_slice %140 {offsets = [0, 56], sizes = [1, 8], strides = [1, 1]} : vector<1x128xf32> to vector<1x8xf32>
    %175 = arith.addf %171, %174 : vector<1x8xf32>
    %176 = vector.extract_strided_slice %143 {offsets = [0, 56], sizes = [1, 8], strides = [1, 1]} : vector<1x128xf32> to vector<1x8xf32>
    %177 = arith.addf %173, %176 : vector<1x8xf32>
    %178 = vector.extract_strided_slice %140 {offsets = [0, 64], sizes = [1, 8], strides = [1, 1]} : vector<1x128xf32> to vector<1x8xf32>
    %179 = arith.addf %175, %178 : vector<1x8xf32>
    %180 = vector.extract_strided_slice %143 {offsets = [0, 64], sizes = [1, 8], strides = [1, 1]} : vector<1x128xf32> to vector<1x8xf32>
    %181 = arith.addf %177, %180 : vector<1x8xf32>
    %182 = vector.extract_strided_slice %140 {offsets = [0, 72], sizes = [1, 8], strides = [1, 1]} : vector<1x128xf32> to vector<1x8xf32>
    %183 = arith.addf %179, %182 : vector<1x8xf32>
    %184 = vector.extract_strided_slice %143 {offsets = [0, 72], sizes = [1, 8], strides = [1, 1]} : vector<1x128xf32> to vector<1x8xf32>
    %185 = arith.addf %181, %184 : vector<1x8xf32>
    %186 = vector.extract_strided_slice %140 {offsets = [0, 80], sizes = [1, 8], strides = [1, 1]} : vector<1x128xf32> to vector<1x8xf32>
    %187 = arith.addf %183, %186 : vector<1x8xf32>
    %188 = vector.extract_strided_slice %143 {offsets = [0, 80], sizes = [1, 8], strides = [1, 1]} : vector<1x128xf32> to vector<1x8xf32>
    %189 = arith.addf %185, %188 : vector<1x8xf32>
    %190 = vector.extract_strided_slice %140 {offsets = [0, 88], sizes = [1, 8], strides = [1, 1]} : vector<1x128xf32> to vector<1x8xf32>
    %191 = arith.addf %187, %190 : vector<1x8xf32>
    %192 = vector.extract_strided_slice %143 {offsets = [0, 88], sizes = [1, 8], strides = [1, 1]} : vector<1x128xf32> to vector<1x8xf32>
    %193 = arith.addf %189, %192 : vector<1x8xf32>
    %194 = vector.extract_strided_slice %140 {offsets = [0, 96], sizes = [1, 8], strides = [1, 1]} : vector<1x128xf32> to vector<1x8xf32>
    %195 = arith.addf %191, %194 : vector<1x8xf32>
    %196 = vector.extract_strided_slice %143 {offsets = [0, 96], sizes = [1, 8], strides = [1, 1]} : vector<1x128xf32> to vector<1x8xf32>
    %197 = arith.addf %193, %196 : vector<1x8xf32>
    %198 = vector.extract_strided_slice %140 {offsets = [0, 104], sizes = [1, 8], strides = [1, 1]} : vector<1x128xf32> to vector<1x8xf32>
    %199 = arith.addf %195, %198 : vector<1x8xf32>
    %200 = vector.extract_strided_slice %143 {offsets = [0, 104], sizes = [1, 8], strides = [1, 1]} : vector<1x128xf32> to vector<1x8xf32>
    %201 = arith.addf %197, %200 : vector<1x8xf32>
    %202 = vector.extract_strided_slice %140 {offsets = [0, 112], sizes = [1, 8], strides = [1, 1]} : vector<1x128xf32> to vector<1x8xf32>
    %203 = arith.addf %199, %202 : vector<1x8xf32>
    %204 = vector.extract_strided_slice %143 {offsets = [0, 112], sizes = [1, 8], strides = [1, 1]} : vector<1x128xf32> to vector<1x8xf32>
    %205 = arith.addf %201, %204 : vector<1x8xf32>
    %206 = vector.extract_strided_slice %140 {offsets = [0, 120], sizes = [1, 8], strides = [1, 1]} : vector<1x128xf32> to vector<1x8xf32>
    %207 = arith.addf %203, %206 : vector<1x8xf32>
    %208 = vector.extract_strided_slice %143 {offsets = [0, 120], sizes = [1, 8], strides = [1, 1]} : vector<1x128xf32> to vector<1x8xf32>
    %209 = arith.addf %205, %208 : vector<1x8xf32>
    %cst_76 = arith.constant 0.001953125 : f32
    %210 = vector.broadcast %cst_76 : f32 to vector<1x8xf32>
    %211 = arith.mulf %207, %210 : vector<1x8xf32>
    %cst_77 = arith.constant 0.001953125 : f32
    %212 = vector.broadcast %cst_77 : f32 to vector<1x8xf32>
    %213 = arith.mulf %209, %212 : vector<1x8xf32>
    %214 = arith.mulf %211, %211 : vector<1x8xf32>
    %215 = arith.subf %213, %214 : vector<1x8xf32>
    %c0_78 = arith.constant 0 : index
    %c0_79 = arith.constant 0 : index
    %216 = vector.load %arg5[%c0_78, %c0_79] : memref<1x8xf32, #tpu.memory_space<vmem>>, vector<1x8xf32>
    %cst_80 = arith.constant 9.99999974E-6 : f32
    %217 = vector.broadcast %cst_80 : f32 to vector<1x8xf32>
    %218 = arith.addf %215, %217 : vector<1x8xf32>
    %219 = math.rsqrt %218 : vector<1x8xf32>
    %220 = arith.mulf %216, %219 : vector<1x8xf32>
    %c0_81 = arith.constant 0 : index
    %c0_82 = arith.constant 0 : index
    %221 = vector.load %arg6[%c0_81, %c0_82] : memref<1x8xf32, #tpu.memory_space<vmem>>, vector<1x8xf32>
    %222 = arith.mulf %211, %220 : vector<1x8xf32>
    %223 = arith.subf %221, %222 : vector<1x8xf32>
    %224 = tpu.concatenate %220, %220, %220, %220, %220, %220, %220, %220, %220, %220, %220, %220, %220, %220, %220, %220 in 1 : vector<1x8xf32>, vector<1x8xf32>, vector<1x8xf32>, vector<1x8xf32>, vector<1x8xf32>, vector<1x8xf32>, vector<1x8xf32>, vector<1x8xf32>, vector<1x8xf32>, vector<1x8xf32>, vector<1x8xf32>, vector<1x8xf32>, vector<1x8xf32>, vector<1x8xf32>, vector<1x8xf32>, vector<1x8xf32> -> vector<1x128xf32>
    %225 = tpu.concatenate %223, %223, %223, %223, %223, %223, %223, %223, %223, %223, %223, %223, %223, %223, %223, %223 in 1 : vector<1x8xf32>, vector<1x8xf32>, vector<1x8xf32>, vector<1x8xf32>, vector<1x8xf32>, vector<1x8xf32>, vector<1x8xf32>, vector<1x8xf32>, vector<1x8xf32>, vector<1x8xf32>, vector<1x8xf32>, vector<1x8xf32>, vector<1x8xf32>, vector<1x8xf32>, vector<1x8xf32>, vector<1x8xf32> -> vector<1x128xf32>
    %226 = vector.broadcast %224 : vector<1x128xf32> to vector<32x128xf32>
    %227 = arith.mulf %138, %226 : vector<32x128xf32>
    %228 = vector.broadcast %225 : vector<1x128xf32> to vector<32x128xf32>
    %229 = arith.addf %227, %228 : vector<32x128xf32>
    %cst_83 = arith.constant 0.000000e+00 : f32
    %230 = vector.broadcast %cst_83 : f32 to vector<32x128xf32>
    %231 = arith.maximumf %229, %230 : vector<32x128xf32>
    %c0_84 = arith.constant 0 : index
    %c0_85 = arith.constant 0 : index
    %232 = vector.load %arg7[%c0_84, %c0_85] : memref<32x128xf32, #tpu.memory_space<vmem>>, vector<32x128xf32>
    tpu.vector_store %arg7[%c0_84, %c0_85], %231 {strides = array<i32>} : memref<32x128xf32, #tpu.memory_space<vmem>>, vector<32x128xf32>,
    return
  }
}

</mosaic_0001>

<bundles_post_ra>
// kernel: tpu_custom_call.1
= control target key start
LH: loop header
LB: loop body
LE: loop exit
PB: predicated region body
PF: predicated region fallthrough
CT: control target
= control target key end

     0   :  { %12 = vsyncpa [#allocation5], 0  ;;  %s2661_s0 = inlined_call_operand.hbm [shape: f32[2,16,64], index: 0, kind: input, shape index: {}]   ;;  %s2662_s1 = inlined_call_operand.hbm [shape: bf16[3,64,128], index: 1, kind: input, shape index: {}]   ;;  %s2663_s2 = inlined_call_operand.vmem [shape: f32[1,8], index: 2, kind: input, shape index: {}]   ;;  %s2664_s3 = inlined_call_operand.vmem [shape: f32[1,8], index: 3, kind: input, shape index: {}]   ;;  %s2665_s4 = inlined_call_operand.hbm [shape: bf16[3,128,128], index: 4, kind: input, shape index: {}]   ;;  %s2666_s5 = inlined_call_operand.vmem [shape: f32[1,8], index: 5, kind: input, shape index: {}]   ;;  %s2667_s6 = inlined_call_operand.vmem [shape: f32[1,8], index: 6, kind: input, shape index: {}]   ;;  %s2668_s7 = inlined_call_operand.hbm [shape: f32[32,128], index: 7, kind: output, shape index: {}]  }
   0x1   :  { %13 = vsyncpa [#allocation8], 0 }
   0x2   :  { %14 = vsyncpa [#allocation6], 0  ;;  %s2104_s24 = smov [#allocation7]   ;;  %s2010_s28 = scalar_lea.hbm %s2662_s1, 1536 }
   0x3   :  { %s32_s25 = sshll.u32 %s2104_s24, 4  ;;  %p2011_p0 = scmp.ne.s32.totalorder %s2662_s1, %s2010_s28  ;;  %s33_s25 = int_to_ptr.vmem [resolvable:$true] %s32_s25 }
   0x4   :  { %p2014_p1 = scmp.lt.u32.totalorder %s2010_s28, %s2662_s1 }
   0x6   :  { %p2016_p2 = pnand %p2014_p1, %p2011_p0 }
   0x8   :  { %2019 = shalt.err (!%p2016_p2)
}
   0x9   :  { %s2020_s10 = scalar_lea.vmem %s33_s25, 1536  ;;  %p2025_p4 = scmp.lt.s32.totalorder %s33_s25, %s33_s25 }
   0xa   :  { %p2021_p3 = scmp.ne.s32.totalorder %s33_s25, %s2020_s10  ;;  %p2026_p5 = scmp.lt.s32.totalorder %s2020_s10, %s2020_s10 }
   0xc   :  { %p2027_p6 = por %p2026_p5, %p2025_p4 }
   0xe   :  { %p2028_p7 = pnand %p2027_p6, %p2021_p3 }
  0x10   :  { %2031 = shalt.err (!%p2028_p7)
}
  0x11   :  { %s2105_s11 = smov 64   ;;  %s2106_s12 = smov 4  }
  0x12   :  { %38 = dma.hbm_to_vmem [thread:$0]  %s2662_s1, 1536, %s33_s25, [#allocation8], %s2105_s11, %s2105_s11, %s2106_s12  }
  0x13   :  { %s2107_s15 = smov [#allocation4]   ;;  %s2032_s19 = scalar_lea.hbm %s2661_s0, 512 }
  0x14   :  { %s20_s16 = sshll.u32 %s2107_s15, 4  ;;  %p2033_p8 = scmp.ne.s32.totalorder %s2661_s0, %s2032_s19  ;;  %s21_s16 = int_to_ptr.vmem [resolvable:$true] %s20_s16 }
  0x15   :  { %p2036_p9 = scmp.lt.u32.totalorder %s2032_s19, %s2661_s0 }
  0x17   :  { %p2038_p10 = pnand %p2036_p9, %p2033_p8 }
  0x19   :  { %2041 = shalt.err (!%p2038_p10)
}
  0x1a   :  { %s2042_s24 = scalar_lea.vmem %s21_s16, 512  ;;  %p2047_p12 = scmp.lt.s32.totalorder %s21_s16, %s21_s16 }
  0x1b   :  { %p2043_p11 = scmp.ne.s32.totalorder %s21_s16, %s2042_s24  ;;  %p2048_p13 = scmp.lt.s32.totalorder %s2042_s24, %s2042_s24 }
  0x1d   :  { %p2049_p0 = por %p2048_p13, %p2047_p12 }
  0x1f   :  { %p2050_p1 = pnand %p2049_p0, %p2043_p11 }
  0x21   :  { %2053 = shalt.err (!%p2050_p1)
}
  0x22   :  { %s2108_s1 = smov 128   ;;  %s2109_s25 = smov 8  }
  0x23   :  { %26 = dma.hbm_to_vmem [thread:$0]  %s2661_s0, 512, %s21_s16, [#allocation5], %s2108_s1, %s2108_s1, %s2109_s25  }
  0x24   :  { %s2110_s28 = smov [#allocation9]   ;;  %s2054_s9 = scalar_lea.hbm %s2665_s4, 3072 }
  0x25   :  { %s48_s29 = sshll.u32 %s2110_s28, 4  ;;  %p2055_p2 = scmp.ne.s32.totalorder %s2665_s4, %s2054_s9  ;;  %s49_s29 = int_to_ptr.vmem [resolvable:$true] %s48_s29 }
  0x26   :  { %p2058_p3 = scmp.lt.u32.totalorder %s2054_s9, %s2665_s4 }
  0x28   :  { %p2060_p4 = pnand %p2058_p3, %p2055_p2 }
  0x2a   :  { %2063 = shalt.err (!%p2060_p4)
}
  0x2b   :  { %s2064_s17 = scalar_lea.vmem %s49_s29, 3072  ;;  %p2069_p6 = scmp.lt.s32.totalorder %s49_s29, %s49_s29 }
  0x2c   :  { %p2065_p5 = scmp.ne.s32.totalorder %s49_s29, %s2064_s17  ;;  %p2070_p7 = scmp.lt.s32.totalorder %s2064_s17, %s2064_s17 }
  0x2e   :  { %p2071_p8 = por %p2070_p7, %p2069_p6 }
  0x30   :  { %p2072_p9 = pnand %p2071_p8, %p2065_p5 }
  0x32   :  { %2075 = shalt.err (!%p2072_p9)
}
  0x33   :  { %54 = dma.hbm_to_vmem [thread:$0]  %s2665_s4, 3072, %s49_s29, [#allocation8], %s2105_s11, %s2105_s11, %s2106_s12  }
  0x34   :  { %2098 = dma.done.wait [#allocation5], 512  }
  0x35   :  { %2099 = vsyncadd [#allocation5], 4294966784 }
  0x36   :  { %2100 = dma.done.wait [#allocation8], 4608  }
  0x37   :  { %2101 = vsyncadd [#allocation8], 4294962688  ;;  %vm69_vm0 = vcmask 516096   ;;  %vm70_vm1 = vsmask.f32 256  ;;  %v1966_v1 = vld [vmem:[#allocation7 + $0x20] sm:$0xff]  }
  0x38   :  { %vm2211_vm2 = vmand %vm69_vm0, %vm70_vm1  ;;  %vm2670_vm3 = vsmask.f32 7938  ;;  %v1967_v2 = vld [vmem:[#allocation7 + $0x28] sm:$0xff]   ;;  %1833 = vmatprep.subr.bf16.mxu0 %v1966_v1  ;;  %v1968_v4 = vld [vmem:[#allocation7 + $0x30] sm:$0xff]   ;;  %vm102_vm5 = vsmask.f32 4368 }
  0x39   :  { %vm2216_vm4 = vmand %vm69_vm0, %vm2670_vm3  ;;  %1834 = vmatpush3.bf16.msra.mxu0 %v1966_v1  ;;  %v72_v5 = vld [vmem:[#allocation2] sm:$0x1]  ;;  %v75_v6 = vld [vmem:[#allocation2 + $0xc] sm:$0x1]  ;;  %vm144_vm6 = vcmask 519168   ;;  %vm265_vm12 = vcmask 523264  }
  0x3a   :  { %1835 = vmatprep.subr.bf16.mxu0 %v1967_v2  ;;  %v80_v7 = vld [vmem:[#allocation2 + $0x8] sm:$0x1]  ;;  %v73_v8 = vsel %vm2211_vm2, 0, %v72_v5  ;;  %v76_v9 = vsel %vm2211_vm2, 0, %v75_v6  ;;  %v83_v11 = vld [vmem:[#allocation2 + $0x14] sm:$0x1]  ;;  %vm2232_vm7 = vmand %vm144_vm6, %vm2670_vm3 }
  0x3b   :  { %v81_v10 = vsel %vm2216_vm4, 0, %v80_v7  ;;  %v86_v12 = vld [vmem:[#allocation4] sm:$0xff]  ;;  %74 = vst [vmem:[#allocation2] sm:$0x1] %v73_v8  ;;  %77 = vst [vmem:[#allocation2 + $0xc] sm:$0x1] %v76_v9 }
  0x3c   :  { %82 = vst [vmem:[#allocation2 + $0x8] sm:$0x1] %v81_v10  ;;  %v84_v13 = vsel %vm2216_vm4, 0, %v83_v11  ;;  %v87_v14 = vld [vmem:[#allocation4 + $0x8] sm:$0xff]  ;;  %v88_v15 = vld [vmem:[#allocation4 + $0x10] sm:$0xff]  ;;  %v89_v16 = vld [vmem:[#allocation4 + $0x18] sm:$0xff]  ;;  %v1777_v17 = vpack.c.bf16 %v86_v12, %v86_v12 }
  0x3d   :  { %1836 = vmatpush3.bf16.msra.mxu0 %v1967_v2  ;;  %v1969_v18 = vld [vmem:[#allocation7 + $0x38] sm:$0xff]   ;;  %v1778_v19 = vpack.c.bf16 %v87_v14, %v87_v14  ;;  %v1779_v20 = vpack.c.bf16 %v88_v15, %v88_v15  ;;  %v1780_v21 = vpack.c.bf16 %v89_v16, %v89_v16  ;;  %85 = vst [vmem:[#allocation2 + $0x14] sm:$0x1] %v84_v13  ;;  %v2228_v31 = vld [vmem:[#allocation7] sm:$0xff]   ;;  %vm2238_vm8 = vmor %vm70_vm1, %vm102_vm5  ;;  %vm175_vm9 = vsmask.f32 3328 }
  0x3e   :  { %1837 = vmatprep.subr.bf16.mxu0 %v1968_v4  ;;  %v105_v22 = vshrl.u32 %v1777_v17, 16  ;;  %v108_v23 = vshll.u32 %v1777_v17, 16  ;;  %vm176_vm10 = vsmask.f32 7440  ;;  %vm416_vm13 = vcmask 1042432   ;;  %s2111_s4 = smov 112  }
  0x3f   :  { %v113_v24 = vshrl.u32 %v1778_v19, 16  ;;  %v116_v25 = vshll.u32 %v1778_v19, 16  ;;  %v122_v26 = vshrl.u32 %v1779_v20, 16  ;;  %v125_v27 = vshll.u32 %v1779_v20, 16  ;;  %vm2276_vm11 = vmor %vm175_vm9, %vm176_vm10  ;;  %s2112_s12 = smov 120   ;;  %s2113_s18 = smov 104  }
  0x40   :  { %v107_v28 = vrot.slane %v105_v22, 7  ;;  %v130_v29 = vshrl.u32 %v1780_v21, 16  ;;  %v133_v30 = vshll.u32 %v1780_v21, 16  ;;  %vm417_vm14 = vcmask 1046532   ;;  %s2114_s19 = smov 96   ;;  %s2115_s20 = smov 88  }
  0x41   :  { %1838 = vmatpush3.bf16.msra.mxu0 %v1968_v4  ;;  %v115_v32 = vrot.slane %v113_v24, 7  ;;  %v124_v33 = vrot.slane %v122_v26, 7  ;;  %vm2298_vm15 = vmor %vm416_vm13, %vm417_vm14  ;;  %s2116_s21 = smov 80   ;;  %s2117_s22 = smov 72   ;;  %vm852_vm0 = vcmask 1040384   ;;  %vm740_vm5 = vcmask 130048  }
  0x42   :  { %1839 = vmatprep.subr.bf16.mxu0 %v1969_v18  ;;  %v110_v36 = vor.u32 %v108_v23, %v107_v28  ;;  %v111_v37 = vrot.slane %v107_v28, 4  ;;  %v132_v38 = vrot.slane %v130_v29, 7  ;;  %v146_v43 = vld [vmem:[#allocation2] sm:$0xf]  ;;  %v154_v47 = vld [vmem:[#allocation2 + $0xc] sm:$0xf]  ;;  %vm860_vm4 = vmand %vm852_vm0, %vm2670_vm3 }
  0x43   :  { %v118_v39 = vor.u32 %v116_v25, %v115_v32  ;;  %v120_v40 = vrot.slane %v115_v32, 4  ;;  %v127_v41 = vor.u32 %v125_v27, %v124_v33  ;;  %v128_v42 = vrot.slane %v124_v33, 4  ;;  %v151_v44 = vld [vmem:[#allocation2 + $0x8] sm:$0x1]  ;;  %v1971_v29 = vld [vmem:[#allocation7 + $0x8] sm:$0xff]   ;;  %s2118_s23 = smov 56  }
  0x44   :  { %v135_v45 = vor.u32 %v133_v30, %v132_v38  ;;  %v147_v46 = vsel %vm2232_vm7, %v110_v36, %v146_v43  ;;  %v137_v48 = vrot.slane %v132_v38, 4  ;;  %v158_v49 = vld [vmem:[#allocation2 + $0x14] sm:$0x1]  ;;  %s2119_s24 = smov 48   ;;  %s2120_s26 = smov 40   ;;  %vm746_vm9 = vcmask 326656  }
  0x45   :  { %1840 = vmatpush3.bf16.msra.mxu0 %v1969_v18  ;;  %v119_v50 = vsel %vm2238_vm8, %v111_v37, %v118_v39  ;;  %148 = vst [vmem:[#allocation2] sm:$0xf] %v147_v46  ;;  %v152_v51 = vsel %vm2211_vm2, %v120_v40, %v151_v44  ;;  %v155_v52 = vsel %vm2232_vm7, %v127_v41, %v154_v47  ;;  %v1972_v37 = vld [vmem:[#allocation7 + $0x10] sm:$0xff]   ;;  %v1973_v40 = vld [vmem:[#allocation7 + $0x18] sm:$0xff]   ;;  %s2121_s27 = smov 32   ;;  %s2122_s28 = smov 24  }
  0x46   :  { %v136_v53 = vsel %vm2238_vm8, %v128_v42, %v135_v45  ;;  %150 = vst.msk [vmem:[#allocation2 + $0x4] sm:$0xf] %vm144_vm6, %v119_v50  ;;  %153 = vst [vmem:[#allocation2 + $0x8] sm:$0x1] %v152_v51  ;;  %1845 = vmatprep.subr.bf16.mxu0 %v2228_v31  ;;  %v159_v54 = vsel %vm2211_vm2, %v137_v48, %v158_v49  ;;  %v1977_v48 = vld [vmem:[#allocation7 + $0x48] sm:$0xff]   ;;  %v1978_v50 = vld [vmem:[#allocation7 + $0x50] sm:$0xff]  }
  0x47   :  { %156 = vst [vmem:[#allocation2 + $0xc] sm:$0xf] %v155_v52  ;;  %157 = vst.msk [vmem:[#allocation2 + $0x10] sm:$0xf] %vm144_vm6, %v136_v53  ;;  %s2123_s29 = smov 16   ;;  %vm2671_vm6 = vcmask 195584  }
  0x48   :  { %160 = vst [vmem:[#allocation2 + $0x14] sm:$0x1] %v159_v54  ;;  %vm2422_vm2 = vmand %vm852_vm0, %vm70_vm1  ;;  %vm2669_vm1 = vcmask 64512   ;;  %vm2672_vm7 = vcmask 261120   ;;  %vm748_vm10 = vcmask 392192   ;;  %vm750_vm13 = vcmask 457728  }
  0x49   :  { %vm753_vm14 = vcmask 588800   ;;  %vm755_vm0 = vcmask 654336   ;;  %vm2675_vm3 = vcmask 850944  }
  0x4c   :  { %v161_v55 = vld [vmem:[#allocation2] sm:$0xf] }
  0x4d   :  { %v2257_v56 = vld [vmem:[#allocation2 + $0x4] sm:$0xf]  ;;  %v2259_v57 = vld [vmem:[#allocation2 + $0x8] sm:$0x1]  ;;  %v179_v58 = vshrl.u32 %v161_v55, 16  ;;  %v182_v59 = vshll.u32 %v161_v55, 16 }
  0x4e   :  { %v188_v60 = vshll.u32 %v2257_v56, 16  ;;  %v192_v61 = vshrl.u32 %v2257_v56, 16  ;;  %v198_v62 = vshll.u32 %v2259_v57, 16  ;;  %v2264_v63 = vld [vmem:[#allocation2 + $0xc] sm:$0xf]  ;;  %v421_v30 = vrot.slane %v2257_v56, 5 }
  0x4f   :  { %v181_v0 = vrot.slane %v179_v58, 4  ;;  %v184_v1 = vrot.slane %v182_v59, 5  ;;  %v2266_v2 = vld [vmem:[#allocation2 + $0x10] sm:$0xf]  ;;  %v2268_v3 = vld [vmem:[#allocation2 + $0x14] sm:$0x1]  ;;  %v1723_v34 = vcombine.low %v161_v55, %v2257_v56 }
  0x50   :  { %v190_v4 = vrot.slane %v188_v60, 5  ;;  %v194_v5 = vrot.slane %v192_v61, 4  ;;  %v203_v6 = vshrl.u32 %v2264_v63, 16  ;;  %v206_v8 = vshll.u32 %v2264_v63, 16  ;;  %v410_v38 = vld [vmem:[#allocation2] sm:$0xe] }
  0x51   :  { %v185_v7 = vor.u32 %v184_v1, %v181_v0  ;;  %v212_v9 = vshll.u32 %v2266_v2, 16  ;;  %v216_v10 = vshrl.u32 %v2266_v2, 16  ;;  %v200_v13 = vrot.slane %v198_v62, 5  ;;  %v411_v51 = vld [vmem:[#allocation2 + $0xc] sm:$0xe] }
  0x52   :  { %v195_v12 = vor.u32 %v194_v5, %v190_v4  ;;  %v205_v14 = vrot.slane %v203_v6, 4  ;;  %v222_v15 = vshll.u32 %v2268_v3, 16  ;;  %v208_v17 = vrot.slane %v206_v8, 5  ;;  %v1979_v55 = vld [vmem:[#allocation7 + $0x58] sm:$0xff]  }
  0x53   :  { %v186_v16 = vrot.slane %v185_v7, 4  ;;  %v214_v18 = vrot.slane %v212_v9, 5  ;;  %v218_v19 = vrot.slane %v216_v10, 4  ;;  %v424_v39 = vrot.slane %v2259_v57, 5 }
  0x54   :  { %v196_v20 = vrot.slane %v195_v12, 4  ;;  %v209_v22 = vor.u32 %v208_v17, %v205_v14  ;;  %v224_v24 = vrot.slane %v222_v15, 5  ;;  %v1731_v41 = vrot.slane %v410_v38, 9 }
  0x55   :  { %v191_v21 = vsel %vm2276_vm11, %v186_v16, %v190_v4  ;;  %v219_v23 = vor.u32 %v218_v19, %v214_v18  ;;  %v423_v42 = vrot.slane %v421_v30, 4  ;;  %v1724_v46 = vcombine.low %v2264_v63, %v2266_v2 }
  0x56   :  { %v201_v25 = vsel %vm2276_vm11, %v196_v20, %v200_v13  ;;  %v210_v27 = vrot.slane %v209_v22, 4  ;;  %v422_v44 = vsel %vm2298_vm15, %v1731_v41, %v421_v30  ;;  %v428_v49 = vrot.slane %v2266_v2, 5 }
  0x57   :  { %v1715_v26 = vcombine.low %v191_v21, %v201_v25  ;;  %v220_v28 = vrot.slane %v219_v23, 4  ;;  %v425_v45 = vsel %vm2298_vm15, %v423_v42, %v424_v39  ;;  %v431_v52 = vrot.slane %v2268_v3, 5 }
  0x58   :  { %v215_v32 = vsel %vm2276_vm11, %v210_v27, %v214_v18  ;;  %v1733_v47 = vcombine.low %v422_v44, %v425_v45  ;;  %v1732_v53 = vrot.slane %v411_v51, 9  ;;  %v430_v54 = vrot.slane %v428_v49, 4 }
  0x59   :  { %1841 = vmatprep.mubr.msk.bf16.mxu0 %vm265_vm12, %v1715_v26  ;;  %v225_v33 = vsel %vm2276_vm11, %v220_v28, %v224_v24 }
  0x5a   :  { %v1716_v36 = vcombine.low %v215_v32, %v225_v33  ;;  %v429_v56 = vsel %vm2298_vm15, %v1732_v53, %v428_v49  ;;  %v432_v57 = vsel %vm2298_vm15, %v430_v54, %v431_v52 }
  0x5b   :  { %v1734_v58 = vcombine.low %v429_v56, %v432_v57 }
  0x5c   :  { %1842 = vmatmul.mubr.msk.bf16.vlgmr.msra.gmra.mrb[0].mxu0 %vm265_vm12, %v1716_v36 }
  0x5d   :  { %1846 = vmatpush3.bf16.msra.mxu0 %v2228_v31  ;;  %1853 = vmatprep.mubr.msk.bf16.mxu0 %vm265_vm12, %v1723_v34  ;;  %v1975_v31 = vld [vmem:[#allocation7 + $0x40] sm:$0xff]  }
  0x5e   :  { %1847 = vmatprep.subr.bf16.mxu0 %v1971_v29 }
  0x61   :  { %1848 = vmatpush3.bf16.msra.mxu0 %v1971_v29 }
  0x62   :  { %1849 = vmatprep.subr.bf16.mxu0 %v1972_v37 }
  0x65   :  { %1850 = vmatpush3.bf16.msra.mxu0 %v1972_v37 }
  0x66   :  { %1851 = vmatprep.subr.bf16.mxu0 %v1973_v40 }
  0x69   :  { %1852 = vmatpush3.bf16.msra.mxu0 %v1973_v40 }
  0x6a   :  { %1857 = vmatprep.subr.bf16.mxu0 %v1975_v31 }
  0x6c   :  { %1854 = vmatmul.mubr.msk.bf16.vlgmr.msra.gmra.mrb[0].mxu0 %vm265_vm12, %v1724_v46 }
  0x6d   :  { %1858 = vmatpush3.bf16.msra.mxu0 %v1975_v31  ;;  %1865 = vmatprep.mubr.msk.bf16.mxu0 %vm265_vm12, %v1733_v47 }
  0x6e   :  { %1859 = vmatprep.subr.bf16.mxu0 %v1977_v48 }
  0x71   :  { %1860 = vmatpush3.bf16.msra.mxu0 %v1977_v48 }
  0x72   :  { %1861 = vmatprep.subr.bf16.mxu0 %v1978_v50 }
  0x75   :  { %1862 = vmatpush3.bf16.msra.mxu0 %v1978_v50 }
  0x76   :  { %1863 = vmatprep.subr.bf16.mxu0 %v1979_v55 }
  0x79   :  { %1864 = vmatpush3.bf16.msra.mxu0 %v1979_v55 }
  0x7c   :  { %1866 = vmatmul.mubr.msk.bf16.vlgmr.msra.gmra.mrb[0].mxu0 %vm265_vm12, %v1734_v58 }
 0x14f   :  { %v2317_v59 = vpop.f32.mrb[0].mxu0 }
 0x150   :  { %v2319_v60 = vpop.f32.mrb[1].mxu0  ;;  %v542_v2 = vmul.f32 %v2317_v59, %v2317_v59 }
 0x151   :  { %v2321_v61 = vpop.f32.mrb[2].mxu0  ;;  %v540_v63 = vmul.f32 %v2319_v60, %v2319_v60 }
 0x152   :  { %v2323_v62 = vpop.f32.mrb[3].mxu0  ;;  %v543_v5 = vmul.f32 %v2321_v61, %v2321_v61 }
 0x153   :  { %v531_v0 = vadd.f32 %v2323_v62, %v2319_v60  ;;  %v541_v1 = vmul.f32 %v2323_v62, %v2323_v62 }
 0x155   :  { %v532_v3 = vadd.f32 %v2317_v59, %v531_v0  ;;  %v544_v4 = vadd.f32 %v541_v1, %v540_v63 }
 0x157   :  { %v533_v6 = vadd.f32 %v2321_v61, %v532_v3  ;;  %v545_v7 = vadd.f32 %v544_v4, %v542_v2 }
 0x159   :  { %v534_v8 = vrot.slane %v533_v6, 4  ;;  %v546_v9 = vadd.f32 %v545_v7, %v543_v5 }
 0x15b   :  { %v535_v10 = vadd.f32 %v534_v8, %v533_v6  ;;  %v547_v12 = vrot.slane %v546_v9, 4 }
 0x15d   :  { %v536_v13 = vrot.slane %v535_v10, 2  ;;  %v548_v14 = vadd.f32 %v547_v12, %v546_v9 }
 0x15f   :  { %v537_v15 = vadd.f32 %v536_v13, %v535_v10  ;;  %v549_v16 = vrot.slane %v548_v14, 2 }
 0x161   :  { %v538_v17 = vrot.slane %v537_v15, 1  ;;  %v550_v18 = vadd.f32 %v549_v16, %v548_v14 }
 0x163   :  { %v539_v19 = vadd.f32 %v538_v17, %v537_v15  ;;  %v551_v20 = vrot.slane %v550_v18, 1 }
 0x165   :  { %565 = vrot.lane.b32.xlu1 %v539_v19, %s2111_s4  ;;  %556 = vrot.lane.b32.xlu0 %v539_v19, %s2112_s12  ;;  %v552_v21 = vadd.f32 %v551_v20, %v550_v18 }
 0x169   :  { %569 = vrot.lane.b32.xlu1 %v552_v21, %s2111_s4  ;;  %573 = vrot.lane.b32.xlu0 %v539_v19, %s2113_s18 }
 0x16d   :  { %577 = vrot.lane.b32.xlu1 %v552_v21, %s2113_s18  ;;  %581 = vrot.lane.b32.xlu0 %v539_v19, %s2114_s19 }
 0x171   :  { %585 = vrot.lane.b32.xlu1 %v552_v21, %s2114_s19  ;;  %589 = vrot.lane.b32.xlu0 %v539_v19, %s2115_s20 }
 0x175   :  { %593 = vrot.lane.b32.xlu1 %v552_v21, %s2115_s20  ;;  %597 = vrot.lane.b32.xlu0 %v539_v19, %s2116_s21 }
 0x179   :  { %601 = vrot.lane.b32.xlu1 %v552_v21, %s2116_s21  ;;  %605 = vrot.lane.b32.xlu0 %v539_v19, %s2117_s22 }
 0x17d   :  { %609 = vrot.lane.b32.xlu1 %v552_v21, %s2117_s22  ;;  %613 = vrot.lane.b32.xlu0 %v539_v19, %s2105_s11 }
 0x181   :  { %617 = vrot.lane.b32.xlu1 %v552_v21, %s2105_s11  ;;  %561 = vrot.lane.b32.xlu0 %v552_v21, %s2112_s12 }
 0x185   :  { %625 = vrot.lane.b32.xlu1 %v552_v21, %s2118_s23  ;;  %621 = vrot.lane.b32.xlu0 %v539_v19, %s2118_s23 }
 0x189   :  { %633 = vrot.lane.b32.xlu1 %v552_v21, %s2119_s24  ;;  %629 = vrot.lane.b32.xlu0 %v539_v19, %s2119_s24 }
 0x18d   :  { %641 = vrot.lane.b32.xlu1 %v552_v21, %s2120_s26  ;;  %637 = vrot.lane.b32.xlu0 %v539_v19, %s2120_s26 }
 0x191   :  { %649 = vrot.lane.b32.xlu1 %v552_v21, %s2121_s27  ;;  %645 = vrot.lane.b32.xlu0 %v539_v19, %s2121_s27 }
 0x195   :  { %657 = vrot.lane.b32.xlu1 %v552_v21, %s2122_s28  ;;  %653 = vrot.lane.b32.xlu0 %v539_v19, %s2122_s28 }
 0x199   :  { %665 = vrot.lane.b32.xlu1 %v552_v21, %s2123_s29  ;;  %661 = vrot.lane.b32.xlu0 %v539_v19, %s2123_s29 }
 0x19d   :  { %673 = vrot.lane.b32.xlu1 %v552_v21, %s2109_s25  ;;  %669 = vrot.lane.b32.xlu0 %v539_v19, %s2109_s25 }
 0x1d7   :  { %v566_v22 = vpop.permute.xlu1 %565  ;;  %v557_v23 = vpop.permute.xlu0 %556 }
 0x1d8   :  { %v559_v38 = vadd.f32 %v557_v23, %v539_v19 }
 0x1da   :  { %v568_v41 = vadd.f32 %v566_v22, %v559_v38  ;;  %v685_v38 = vld [vmem:[%s2664_s3] sm:$0x1] }
 0x1db   :  { %v570_v24 = vpop.permute.xlu1 %569  ;;  %v574_v25 = vpop.permute.xlu0 %573 }
 0x1dc   :  { %v576_v46 = vadd.f32 %v574_v25, %v568_v41 }
 0x1df   :  { %v578_v26 = vpop.permute.xlu1 %577  ;;  %v582_v27 = vpop.permute.xlu0 %581 }
 0x1e0   :  { %v584_v48 = vadd.f32 %v582_v27, %v576_v46  ;;  %v857_v46 = vld [vmem:[#allocation3 + $0xc] sm:$0x1] }
 0x1e3   :  { %v586_v28 = vpop.permute.xlu1 %585  ;;  %v590_v29 = vpop.permute.xlu0 %589 }
 0x1e4   :  { %v592_v52 = vadd.f32 %v590_v29, %v584_v48  ;;  %v861_v48 = vld [vmem:[#allocation3 + $0x8] sm:$0x1] }
 0x1e7   :  { %v594_v30 = vpop.permute.xlu1 %593  ;;  %v598_v32 = vpop.permute.xlu0 %597 }
 0x1e8   :  { %v600_v54 = vadd.f32 %v598_v32, %v592_v52  ;;  %v1982_v52 = vld [vmem:[#allocation9 + $0x10] sm:$0xff]  }
 0x1eb   :  { %v602_v33 = vpop.permute.xlu1 %601  ;;  %v606_v34 = vpop.permute.xlu0 %605 }
 0x1ec   :  { %v608_v58 = vadd.f32 %v606_v34, %v600_v54 }
 0x1ef   :  { %v610_v36 = vpop.permute.xlu1 %609  ;;  %v614_v37 = vpop.permute.xlu0 %613 }
 0x1f0   :  { %v616_v0 = vadd.f32 %v614_v37, %v608_v58  ;;  %v1986_v58 = vld [vmem:[#allocation9 + $0x20] sm:$0xff]  }
 0x1f3   :  { %v618_v39 = vpop.permute.xlu1 %617  ;;  %v562_v40 = vpop.permute.xlu0 %561 }
 0x1f4   :  { %v564_v42 = vadd.f32 %v562_v40, %v552_v21 }
 0x1f6   :  { %v572_v31 = vadd.f32 %v570_v24, %v564_v42 }
 0x1f7   :  { %v626_v44 = vpop.permute.xlu1 %625  ;;  %v622_v45 = vpop.permute.xlu0 %621 }
 0x1f8   :  { %v580_v47 = vadd.f32 %v578_v26, %v572_v31  ;;  %v624_v5 = vadd.f32 %v622_v45, %v616_v0  ;;  %v1980_v31 = vld [vmem:[#allocation9] sm:$0xff]   ;;  %v854_v45 = vld [vmem:[#allocation3] sm:$0x1] }
 0x1f9   :  { %1889 = vmatprep.subr.bf16.mxu1 %v1980_v31  ;;  %v1988_v0 = vld [vmem:[#allocation9 + $0x28] sm:$0xff]  }
 0x1fa   :  { %v588_v49 = vadd.f32 %v586_v28, %v580_v47  ;;  %1890 = vmatpush3.bf16.msra.mxu1 %v1980_v31 }
 0x1fb   :  { %v634_v50 = vpop.permute.xlu1 %633  ;;  %v630_v51 = vpop.permute.xlu0 %629 }
 0x1fc   :  { %v596_v53 = vadd.f32 %v594_v30, %v588_v49  ;;  %v632_v7 = vadd.f32 %v630_v51, %v624_v5  ;;  %v689_v30 = vlaneseq  ;;  %v864_v49 = vld [vmem:[#allocation3 + $0x14] sm:$0x1]  ;;  %v858_v51 = vsel %vm2422_vm2, 0, %v857_v46  ;;  %v1993_v5 = vld [vmem:[#allocation9 + $0x68] sm:$0xff]  }
 0x1fd   :  { %859 = vst [vmem:[#allocation3 + $0xc] sm:$0x1] %v858_v51  ;;  %v865_v54 = vsel %vm860_vm4, 0, %v864_v49 }
 0x1fe   :  { %v604_v55 = vadd.f32 %v602_v33, %v596_v53  ;;  %v690_v32 = vshrl.u32 %v689_v30, 7  ;;  %v681_v33 = vld [vmem:[%s2663_s2] sm:$0x1]  ;;  %v862_v53 = vsel %vm860_vm4, 0, %v861_v48  ;;  %866 = vst [vmem:[#allocation3 + $0x14] sm:$0x1] %v865_v54 }
 0x1ff   :  { %v642_v56 = vpop.permute.xlu1 %641  ;;  %v638_v57 = vpop.permute.xlu0 %637  ;;  %863 = vst [vmem:[#allocation3 + $0x8] sm:$0x1] %v862_v53  ;;  %vm757_vm4 = vcmask 719872  }
 0x200   :  { %v612_v63 = vadd.f32 %v610_v36, %v604_v55  ;;  %v640_v12 = vadd.f32 %v638_v57, %v632_v7  ;;  %v2370_v34 = vsub.s32 0, %v690_v32  ;;  %v1983_v55 = vld [vmem:[#allocation9 + $0x40] sm:$0xff]   ;;  %v1985_v57 = vld [vmem:[#allocation9 + $0x48] sm:$0xff]   ;;  %v1997_v7 = vld [vmem:[#allocation9 + $0x70] sm:$0xff]  }
 0x201   :  { %1869 = vmatprep.subr.bf16.mxu0 %v1983_v55 }
 0x202   :  { %v620_v1 = vadd.f32 %v618_v39, %v612_v63  ;;  %1870 = vmatpush3.bf16.msra.mxu0 %v1983_v55  ;;  %v1987_v63 = vld [vmem:[#allocation9 + $0x50] sm:$0xff]  }
 0x203   :  { %v650_v2 = vpop.permute.xlu1 %649  ;;  %v646_v3 = vpop.permute.xlu0 %645  ;;  %1871 = vmatprep.subr.bf16.mxu0 %v1985_v57 }
 0x204   :  { %v628_v4 = vadd.f32 %v626_v44, %v620_v1  ;;  %v648_v14 = vadd.f32 %v646_v3, %v640_v12  ;;  %v1981_v44 = vld [vmem:[#allocation9 + $0x8] sm:$0xff]   ;;  %v1989_v1 = vld [vmem:[#allocation9 + $0x58] sm:$0xff]   ;;  %v1991_v3 = vld [vmem:[#allocation9 + $0x60] sm:$0xff]  }
 0x205   :  { %1891 = vmatprep.subr.bf16.mxu1 %v1981_v44 }
 0x206   :  { %v636_v6 = vadd.f32 %v634_v50, %v628_v4  ;;  %1892 = vmatpush3.bf16.msra.mxu1 %v1981_v44  ;;  %v855_v50 = vsel %vm2422_vm2, 0, %v854_v45  ;;  %1872 = vmatpush3.bf16.msra.mxu0 %v1985_v57  ;;  %v1992_v4 = vld [vmem:[#allocation9 + $0x38] sm:$0xff]  }
 0x207   :  { %v658_v8 = vpop.permute.xlu1 %657  ;;  %v654_v9 = vpop.permute.xlu0 %653  ;;  %856 = vst [vmem:[#allocation3] sm:$0x1] %v855_v50  ;;  %1893 = vmatprep.subr.bf16.mxu1 %v1982_v52  ;;  %1873 = vmatprep.subr.bf16.mxu0 %v1987_v63 }
 0x208   :  { %v644_v10 = vadd.f32 %v642_v56, %v636_v6  ;;  %v656_v18 = vadd.f32 %v654_v9, %v648_v14  ;;  %v1984_v56 = vld [vmem:[#allocation9 + $0x18] sm:$0xff]   ;;  %v2441_v6 = vld [vmem:[#allocation9 + $0x80] sm:$0xff]  }
 0x20a   :  { %v652_v13 = vadd.f32 %v650_v2, %v644_v10  ;;  %1894 = vmatpush3.bf16.msra.mxu1 %v1982_v52  ;;  %1874 = vmatpush3.bf16.msra.mxu0 %v1987_v63  ;;  %v1990_v2 = vld [vmem:[#allocation9 + $0x30] sm:$0xff]  }
 0x20b   :  { %v666_v15 = vpop.permute.xlu1 %665  ;;  %v662_v16 = vpop.permute.xlu0 %661  ;;  %1895 = vmatprep.subr.bf16.mxu1 %v1984_v56  ;;  %1875 = vmatprep.subr.bf16.mxu0 %v1989_v1 }
 0x20c   :  { %v660_v17 = vadd.f32 %v658_v8, %v652_v13  ;;  %v664_v20 = vadd.f32 %v662_v16, %v656_v18  ;;  %v1999_v8 = vld [vmem:[#allocation9 + $0x78] sm:$0xff]  }
 0x20e   :  { %v668_v19 = vadd.f32 %v666_v15, %v660_v17  ;;  %1896 = vmatpush3.bf16.msra.mxu1 %v1984_v56  ;;  %1876 = vmatpush3.bf16.msra.mxu0 %v1989_v1 }
 0x20f   :  { %v674_v21 = vpop.permute.xlu1 %673  ;;  %v670_v22 = vpop.permute.xlu0 %669  ;;  %1897 = vmatprep.subr.bf16.mxu1 %v1986_v58  ;;  %1877 = vmatprep.subr.bf16.mxu0 %v1991_v3 }
 0x210   :  { %v676_v23 = vadd.f32 %v674_v21, %v668_v19  ;;  %v672_v24 = vadd.f32 %v670_v22, %v664_v20 }
 0x212   :  { %v677_v25 = vmul.f32 0.001953125, %v672_v24  ;;  %v678_v26 = vmul.f32 0.001953125, %v676_v23  ;;  %1898 = vmatpush3.bf16.msra.mxu1 %v1986_v58  ;;  %1878 = vmatpush3.bf16.msra.mxu0 %v1991_v3 }
 0x213   :  { %1899 = vmatprep.subr.bf16.mxu1 %v1988_v0  ;;  %1879 = vmatprep.subr.bf16.mxu0 %v1993_v5 }
 0x214   :  { %v679_v27 = vmul.f32 %v677_v25, %v677_v25 }
 0x216   :  { %v680_v28 = vsub.f32 %v678_v26, %v679_v27  ;;  %1900 = vmatpush3.bf16.msra.mxu1 %v1988_v0  ;;  %1880 = vmatpush3.bf16.msra.mxu0 %v1993_v5 }
 0x217   :  { %1901 = vmatprep.subr.bf16.mxu1 %v1990_v2  ;;  %1881 = vmatprep.subr.bf16.mxu0 %v1997_v7 }
 0x218   :  { %v682_v29 = vadd.f32 1e-05, %v680_v28 }
 0x21a   :  { %2006 = vrsqrt.f32 %v682_v29  ;;  %1902 = vmatpush3.bf16.msra.mxu1 %v1990_v2  ;;  %1882 = vmatpush3.bf16.msra.mxu0 %v1997_v7 }
 0x21b   :  { %1903 = vmatprep.subr.bf16.mxu1 %v1992_v4  ;;  %1883 = vmatprep.subr.bf16.mxu0 %v1999_v8 }
 0x21e   :  { %1904 = vmatpush3.bf16.msra.mxu1 %v1992_v4  ;;  %1884 = vmatpush3.bf16.msra.mxu0 %v1999_v8 }
 0x21f   :  { %1909 = vmatprep.subr.bf16.mxu1 %v2441_v6 }
 0x224   :  { %v2007_v36 = vpop.eup %2006 }
 0x225   :  { %v2372_v37 = vmul.f32 %v2007_v36, %v681_v33 }
 0x227   :  { %v686_v39 = vmul.f32 %v2372_v37, %v677_v25  ;;  %v692_v40 = vrot.slane %v2372_v37, %v2370_v34 }
 0x229   :  { %v2380_v41 = vsub.f32 %v685_v38, %v686_v39  ;;  %696 = vrot.lane.b32.xlu1 %v692_v40, %s2123_s29  ;;  %693 = vrot.lane.b32.xlu0 %v692_v40, %s2109_s25 }
 0x22b   :  { %v2386_v42 = vrot.slane %v2380_v41, %v2370_v34 }
 0x22d   :  { %699 = vrot.lane.b32.xlu0 %v692_v40, %s2122_s28  ;;  %772 = vrot.lane.b32.xlu1 %v2386_v42, %s2109_s25 }
 0x231   :  { %702 = vrot.lane.b32.xlu0 %v692_v40, %s2121_s27  ;;  %775 = vrot.lane.b32.xlu1 %v2386_v42, %s2123_s29 }
 0x235   :  { %705 = vrot.lane.b32.xlu0 %v692_v40, %s2120_s26  ;;  %778 = vrot.lane.b32.xlu1 %v2386_v42, %s2122_s28 }
 0x239   :  { %708 = vrot.lane.b32.xlu0 %v692_v40, %s2119_s24  ;;  %781 = vrot.lane.b32.xlu1 %v2386_v42, %s2121_s27 }
 0x23d   :  { %711 = vrot.lane.b32.xlu0 %v692_v40, %s2118_s23  ;;  %784 = vrot.lane.b32.xlu1 %v2386_v42, %s2120_s26 }
 0x241   :  { %714 = vrot.lane.b32.xlu0 %v692_v40, %s2105_s11  ;;  %787 = vrot.lane.b32.xlu1 %v2386_v42, %s2119_s24 }
 0x245   :  { %717 = vrot.lane.b32.xlu0 %v692_v40, %s2117_s22  ;;  %790 = vrot.lane.b32.xlu1 %v2386_v42, %s2118_s23 }
 0x249   :  { %720 = vrot.lane.b32.xlu0 %v692_v40, %s2116_s21  ;;  %793 = vrot.lane.b32.xlu1 %v2386_v42, %s2105_s11 }
 0x24d   :  { %723 = vrot.lane.b32.xlu0 %v692_v40, %s2115_s20  ;;  %796 = vrot.lane.b32.xlu1 %v2386_v42, %s2117_s22 }
 0x251   :  { %726 = vrot.lane.b32.xlu0 %v692_v40, %s2114_s19  ;;  %799 = vrot.lane.b32.xlu1 %v2386_v42, %s2116_s21 }
 0x255   :  { %729 = vrot.lane.b32.xlu0 %v692_v40, %s2113_s18  ;;  %802 = vrot.lane.b32.xlu1 %v2386_v42, %s2115_s20 }
 0x259   :  { %732 = vrot.lane.b32.xlu0 %v692_v40, %s2111_s4  ;;  %805 = vrot.lane.b32.xlu1 %v2386_v42, %s2114_s19 }
 0x25d   :  { %735 = vrot.lane.b32.xlu0 %v692_v40, %s2112_s12  ;;  %808 = vrot.lane.b32.xlu1 %v2386_v42, %s2113_s18 }
 0x261   :  { %811 = vrot.lane.b32.xlu0 %v2386_v42, %s2111_s4  ;;  %814 = vrot.lane.b32.xlu1 %v2386_v42, %s2112_s12 }
 0x29b   :  { %v697_v9 = vpop.permute.xlu1 %696  ;;  %v694_v10 = vpop.permute.xlu0 %693 }
 0x29c   :  { %v739_v30 = vsel %vm2669_vm1, %v2372_v37, %v694_v10 }
 0x29d   :  { %v741_v32 = vsel %vm740_vm5, %v739_v30, %v697_v9 }
 0x29f   :  { %v700_v12 = vpop.permute.xlu0 %699  ;;  %v773_v13 = vpop.permute.xlu1 %772 }
 0x2a0   :  { %v743_v38 = vsel %vm2671_vm6, %v741_v32, %v700_v12  ;;  %v817_v42 = vsel %vm2669_vm1, %v2380_v41, %v773_v13  ;;  %vm759_vm1 = vcmask 785408  }
 0x2a3   :  { %v703_v14 = vpop.permute.xlu0 %702  ;;  %v776_v15 = vpop.permute.xlu1 %775 }
 0x2a4   :  { %v745_v39 = vsel %vm2672_vm7, %v743_v38, %v703_v14  ;;  %v818_v45 = vsel %vm740_vm5, %v817_v42, %v776_v15 }
 0x2a7   :  { %v706_v16 = vpop.permute.xlu0 %705  ;;  %v779_v17 = vpop.permute.xlu1 %778 }
 0x2a8   :  { %v747_v40 = vsel %vm746_vm9, %v745_v39, %v706_v16  ;;  %v819_v48 = vsel %vm2671_vm6, %v818_v45, %v779_v17  ;;  %vm2674_vm6 = vcmask 916480  }
 0x2ab   :  { %v709_v18 = vpop.permute.xlu0 %708  ;;  %v782_v19 = vpop.permute.xlu1 %781 }
 0x2ac   :  { %v749_v37 = vsel %vm748_vm10, %v747_v40, %v709_v18  ;;  %v820_v50 = vsel %vm2672_vm7, %v819_v48, %v782_v19  ;;  %vm2673_vm7 = vcmask 982016  }
 0x2af   :  { %v712_v20 = vpop.permute.xlu0 %711  ;;  %v785_v21 = vpop.permute.xlu1 %784 }
 0x2b0   :  { %v751_v46 = vsel %vm750_vm13, %v749_v37, %v712_v20  ;;  %v821_v41 = vsel %vm746_vm9, %v820_v50, %v785_v21  ;;  %v928_v50 = vld [vmem:[#allocation3 + $0xc] sm:$0xf] }
 0x2b3   :  { %v715_v22 = vpop.permute.xlu0 %714  ;;  %v788_v23 = vpop.permute.xlu1 %787 }
 0x2b4   :  { %v752_v49 = vsel %vm265_vm12, %v751_v46, %v715_v22  ;;  %v822_v55 = vsel %vm748_vm10, %v821_v41, %v788_v23 }
 0x2b7   :  { %v718_v24 = vpop.permute.xlu0 %717  ;;  %v791_v25 = vpop.permute.xlu1 %790 }
 0x2b8   :  { %v754_v51 = vsel %vm753_vm14, %v752_v49, %v718_v24  ;;  %v823_v57 = vsel %vm750_vm13, %v822_v55, %v791_v25 }
 0x2bb   :  { %v721_v26 = vpop.permute.xlu0 %720  ;;  %v794_v27 = vpop.permute.xlu1 %793 }
 0x2bc   :  { %v756_v52 = vsel %vm755_vm0, %v754_v51, %v721_v26  ;;  %v824_v63 = vsel %vm265_vm12, %v823_v57, %v794_v27  ;;  %v932_v51 = vld [vmem:[#allocation3 + $0x14] sm:$0x1] }
 0x2bf   :  { %v724_v28 = vpop.permute.xlu0 %723  ;;  %v797_v29 = vpop.permute.xlu1 %796 }
 0x2c0   :  { %v758_v56 = vsel %vm757_vm4, %v756_v52, %v724_v28  ;;  %v825_v1 = vsel %vm753_vm14, %v824_v63, %v797_v29 }
 0x2c3   :  { %v727_v33 = vpop.permute.xlu0 %726  ;;  %v800_v36 = vpop.permute.xlu1 %799 }
 0x2c4   :  { %v760_v58 = vsel %vm759_vm1, %v758_v56, %v727_v33  ;;  %v826_v5 = vsel %vm755_vm0, %v825_v1, %v800_v36 }
 0x2c7   :  { %v730_v31 = vpop.permute.xlu0 %729  ;;  %v803_v44 = vpop.permute.xlu1 %802 }
 0x2c8   :  { %v762_v0 = vsel %vm2675_vm3, %v760_v58, %v730_v31  ;;  %v827_v8 = vsel %vm757_vm4, %v826_v5, %v803_v44  ;;  %v925_v44 = vld [vmem:[#allocation3 + $0x8] sm:$0x1] }
 0x2cb   :  { %v733_v53 = vpop.permute.xlu0 %732  ;;  %v806_v54 = vpop.permute.xlu1 %805 }
 0x2cc   :  { %v764_v2 = vsel %vm2674_vm6, %v762_v0, %v733_v53  ;;  %v828_v10 = vsel %vm759_vm1, %v827_v8, %v806_v54 }
 0x2cf   :  { %v736_v3 = vpop.permute.xlu0 %735  ;;  %v809_v4 = vpop.permute.xlu1 %808 }
 0x2d0   :  { %v766_v7 = vsel %vm2673_vm7, %v764_v2, %v736_v3  ;;  %v829_v12 = vsel %vm2675_vm3, %v828_v10, %v809_v4 }
 0x2d1   :  { %v835_v9 = vrot.slane %v766_v7, %v2370_v34 }
 0x2d3   :  { %v812_v13 = vpop.permute.xlu0 %811  ;;  %v815_v14 = vpop.permute.xlu1 %814  ;;  %v836_v16 = vmul.f32 %v835_v9, %v2319_v60  ;;  %v837_v18 = vmul.f32 %v835_v9, %v2323_v62  ;;  %v838_v19 = vmul.f32 %v2317_v59, %v835_v9  ;;  %v839_v20 = vmul.f32 %v2321_v61, %v835_v9  ;;  %v921_v61 = vld [vmem:[#allocation3] sm:$0xf] }
 0x2d4   :  { %v830_v15 = vsel %vm2674_vm6, %v829_v12, %v812_v13  ;;  %vm2690_vm6 = vsmask.f32 7938 }
 0x2d5   :  { %v831_v17 = vsel %vm2673_vm7, %v830_v15, %v815_v14  ;;  %vm919_vm7 = vcmask 1043456  }
 0x2d6   :  { %v843_v21 = vrot.slane %v831_v17, %v2370_v34  ;;  %vm2483_vm3 = vmand %vm919_vm7, %vm2690_vm6  ;;  %vm2700_vm7 = vcmask 916480  }
 0x2d8   :  { %v844_v22 = vadd.f32 %v843_v21, %v836_v16  ;;  %v845_v23 = vadd.f32 %v843_v21, %v837_v18  ;;  %v846_v24 = vadd.f32 %v843_v21, %v838_v19  ;;  %v847_v25 = vadd.f32 %v843_v21, %v839_v20 }
 0x2da   :  { %v848_v26 = vmax.f32 %v844_v22, 0.0  ;;  %v849_v27 = vmax.f32 %v845_v23, 0.0  ;;  %v850_v28 = vmax.f32 %v846_v24, 0.0  ;;  %v851_v29 = vmax.f32 %v847_v25, 0.0 }
 0x2dc   :  { %v1781_v30 = vpack.c.bf16 %v848_v26, %v848_v26  ;;  %v1782_v60 = vpack.c.bf16 %v849_v27, %v849_v27  ;;  %v1783_v32 = vpack.c.bf16 %v850_v28, %v850_v28  ;;  %v1784_v33 = vpack.c.bf16 %v851_v29, %v851_v29  ;;  %v1998_v29 = vld [vmem:[#allocation9 + $0x88] sm:$0xff]  }
 0x2de   :  { %v880_v62 = vshrl.u32 %v1781_v30, 16  ;;  %v888_v36 = vshrl.u32 %v1782_v60, 16  ;;  %v897_v59 = vshrl.u32 %v1783_v32, 16  ;;  %v905_v38 = vshrl.u32 %v1784_v33, 16 }
 0x2df   :  { %v883_v40 = vshll.u32 %v1781_v30, 16  ;;  %v891_v37 = vshll.u32 %v1782_v60, 16  ;;  %v900_v46 = vshll.u32 %v1783_v32, 16  ;;  %v908_v49 = vshll.u32 %v1784_v33, 16 }
 0x2e0   :  { %v882_v39 = vrot.slane %v880_v62, 7  ;;  %v890_v42 = vrot.slane %v888_v36, 7  ;;  %v899_v45 = vrot.slane %v897_v59, 7  ;;  %v907_v48 = vrot.slane %v905_v38, 7 }
 0x2e2   :  { %v885_v41 = vor.u32 %v883_v40, %v882_v39  ;;  %v886_v52 = vrot.slane %v882_v39, 4  ;;  %v893_v53 = vor.u32 %v891_v37, %v890_v42  ;;  %v895_v54 = vrot.slane %v890_v42, 4 }
 0x2e3   :  { %v902_v55 = vor.u32 %v900_v46, %v899_v45  ;;  %v903_v56 = vrot.slane %v899_v45, 4  ;;  %v910_v57 = vor.u32 %v908_v49, %v907_v48  ;;  %v912_v58 = vrot.slane %v907_v48, 4  ;;  %v2000_v45 = vld [vmem:[#allocation9 + $0x90] sm:$0xff]  }
 0x2e4   :  { %v894_v63 = vsel %vm2238_vm8, %v886_v52, %v893_v53  ;;  %v922_v0 = vsel %vm2483_vm3, %v885_v41, %v921_v61  ;;  %v926_v1 = vsel %vm2422_vm2, %v895_v54, %v925_v44 }
 0x2e5   :  { %v911_v2 = vsel %vm2238_vm8, %v903_v56, %v910_v57  ;;  %923 = vst [vmem:[#allocation3] sm:$0xf] %v922_v0  ;;  %924 = vst [vmem:[#allocation3 + $0x4] sm:$0xf] %v894_v63  ;;  %v929_v3 = vsel %vm2483_vm3, %v902_v55, %v928_v50  ;;  %v933_v4 = vsel %vm2422_vm2, %v912_v58, %v932_v51  ;;  %v2001_v55 = vld [vmem:[#allocation9 + $0x98] sm:$0xff]   ;;  %v2002_v57 = vld [vmem:[#allocation9 + $0xa0] sm:$0xff]  }
 0x2e6   :  { %927 = vst [vmem:[#allocation3 + $0x8] sm:$0x1] %v926_v1  ;;  %930 = vst [vmem:[#allocation3 + $0xc] sm:$0xf] %v929_v3  ;;  %v2003_v58 = vld [vmem:[#allocation9 + $0xa8] sm:$0xff]   ;;  %v2004_v63 = vld [vmem:[#allocation9 + $0xb0] sm:$0xff]  }
 0x2e7   :  { %931 = vst [vmem:[#allocation3 + $0x10] sm:$0xf] %v911_v2  ;;  %934 = vst [vmem:[#allocation3 + $0x14] sm:$0x1] %v933_v4  ;;  %v2005_v1 = vld [vmem:[#allocation9 + $0xb8] sm:$0xff]   ;;  %vm2693_vm3 = vcmask 64512  }
 0x2e8   :  { %vm2694_vm8 = vcmask 195584  }
 0x2e9   :  { %vm2697_vm2 = vmmov %vm2694_vm8 }
 0x2ec   :  { %v935_v5 = vld [vmem:[#allocation3] sm:$0xf]  ;;  %v936_v7 = vld [vmem:[#allocation3 + $0x4] sm:$0xf] }
 0x2ed   :  { %v958_v8 = vshrl.u32 %v935_v5, 16  ;;  %v961_v9 = vshll.u32 %v935_v5, 16  ;;  %v967_v10 = vshll.u32 %v936_v7, 16  ;;  %v971_v12 = vshrl.u32 %v936_v7, 16  ;;  %v937_v35 = vld [vmem:[#allocation3 + $0xc] sm:$0xf] }
 0x2ee   :  { %v1755_v13 = vcombine.low %v935_v5, %v936_v7  ;;  %v1244_v14 = vrot.slane %v936_v7, 5  ;;  %v2499_v15 = vld [vmem:[#allocation3 + $0x10] sm:$0xf]  ;;  %v982_v16 = vshrl.u32 %v937_v35, 16  ;;  %v985_v17 = vshll.u32 %v937_v35, 16 }
 0x2ef   :  { %v960_v18 = vrot.slane %v958_v8, 4  ;;  %v963_v19 = vrot.slane %v961_v9, 5  ;;  %v969_v47 = vrot.slane %v967_v10, 5  ;;  %v973_v20 = vrot.slane %v971_v12, 4  ;;  %v1236_v21 = vld [vmem:[#allocation3] sm:$0xe] }
 0x2f0   :  { %1905 = vmatprep.mubr.bf16.mxu1 %v1755_v13  ;;  %v984_v22 = vrot.slane %v982_v16, 4  ;;  %v987_v23 = vrot.slane %v985_v17, 5  ;;  %v991_v24 = vshll.u32 %v2499_v15, 16  ;;  %v995_v25 = vshrl.u32 %v2499_v15, 16  ;;  %v955_v26 = vld [vmem:[#allocation3 + $0x8] sm:$0x1] }
 0x2f1   :  { %v964_v27 = vor.u32 %v963_v19, %v960_v18  ;;  %v1756_v28 = vcombine.low %v937_v35, %v2499_v15  ;;  %v1765_v30 = vrot.slane %v1236_v21, 9  ;;  %v956_v60 = vld [vmem:[#allocation3 + $0x14] sm:$0x1]  ;;  %v1246_v36 = vrot.slane %v1244_v14, 4  ;;  %v1237_v11 = vld [vmem:[#allocation3 + $0xc] sm:$0xe] }
 0x2f2   :  { %v988_v32 = vor.u32 %v987_v23, %v984_v22  ;;  %v993_v33 = vrot.slane %v991_v24, 5  ;;  %v997_v62 = vrot.slane %v995_v25, 4  ;;  %v1247_v38 = vrot.slane %v955_v26, 5 }
 0x2f3   :  { %v965_v59 = vrot.slane %v964_v27, 4  ;;  %1906 = vmatmul.mubr.bf16.vlgmr.msra.gmra.mrb[0].mxu1 %v1756_v28  ;;  %v974_v61 = vor.u32 %v973_v20, %v969_v47  ;;  %v977_v40 = vshll.u32 %v955_v26, 16  ;;  %v1001_v37 = vshll.u32 %v956_v60, 16 }
 0x2f4   :  { %v989_v39 = vrot.slane %v988_v32, 4  ;;  %1910 = vmatpush3.bf16.msra.mxu1 %v2441_v6  ;;  %v998_v42 = vor.u32 %v997_v62, %v993_v33  ;;  %v1245_v31 = vsel %vm2298_vm15, %v1765_v30, %v1244_v14  ;;  %v1248_v44 = vsel %vm2298_vm15, %v1246_v36, %v1247_v38 }
 0x2f5   :  { %1911 = vmatprep.subr.bf16.mxu1 %v1998_v29  ;;  %v975_v46 = vrot.slane %v974_v61, 4  ;;  %v1767_v48 = vcombine.low %v1245_v31, %v1248_v44  ;;  %v970_v49 = vsel %vm2276_vm11, %v965_v59, %v969_v47  ;;  %v979_v50 = vrot.slane %v977_v40, 5 }
 0x2f6   :  { %v999_v51 = vrot.slane %v998_v42, 4  ;;  %v994_v6 = vsel %vm2276_vm11, %v989_v39, %v993_v33  ;;  %v1003_v41 = vrot.slane %v1001_v37, 5  ;;  %v1251_v0 = vrot.slane %v2499_v15, 5 }
 0x2f7   :  { %1925 = vmatprep.mubr.bf16.mxu1 %v1767_v48  ;;  %v980_v52 = vsel %vm2276_vm11, %v975_v46, %v979_v50  ;;  %v1766_v3 = vrot.slane %v1237_v11, 9  ;;  %v1254_v4 = vrot.slane %v956_v60, 5 }
 0x2f8   :  { %1912 = vmatpush3.bf16.msra.mxu1 %v1998_v29  ;;  %v1745_v53 = vcombine.low %v970_v49, %v980_v52  ;;  %v1004_v54 = vsel %vm2276_vm11, %v999_v51, %v1003_v41  ;;  %v1253_v2 = vrot.slane %v1251_v0, 4  ;;  %vm2695_vm11 = vcmask 261120  }
 0x2f9   :  { %1913 = vmatprep.subr.bf16.mxu1 %v2000_v45  ;;  %v1746_v56 = vcombine.low %v994_v6, %v1004_v54  ;;  %v1252_v7 = vsel %vm2298_vm15, %v1766_v3, %v1251_v0  ;;  %vm2698_vm6 = vmmov %vm2695_vm11 }
 0x2fa   :  { %1885 = vmatprep.mubr.bf16.mxu0 %v1745_v53  ;;  %v1255_v5 = vsel %vm2298_vm15, %v1253_v2, %v1254_v4  ;;  %vm2696_vm15 = vmmov %vm2693_vm3 }
 0x2fb   :  { %1886 = vmatmul.mubr.bf16.vlgmr.msra.gmra.mrb[4].mxu0 %v1746_v56  ;;  %v1768_v8 = vcombine.low %v1252_v7, %v1255_v5 }
 0x2fc   :  { %1914 = vmatpush3.bf16.msra.mxu1 %v2000_v45 }
 0x2fd   :  { %1915 = vmatprep.subr.bf16.mxu1 %v2001_v55 }
 0x300   :  { %1916 = vmatpush3.bf16.msra.mxu1 %v2001_v55 }
 0x301   :  { %1917 = vmatprep.subr.bf16.mxu1 %v2002_v57 }
 0x304   :  { %1918 = vmatpush3.bf16.msra.mxu1 %v2002_v57 }
 0x305   :  { %1919 = vmatprep.subr.bf16.mxu1 %v2003_v58 }
 0x308   :  { %1920 = vmatpush3.bf16.msra.mxu1 %v2003_v58 }
 0x309   :  { %1921 = vmatprep.subr.bf16.mxu1 %v2004_v63 }
 0x30c   :  { %1922 = vmatpush3.bf16.msra.mxu1 %v2004_v63 }
 0x30d   :  { %1923 = vmatprep.subr.bf16.mxu1 %v2005_v1 }
 0x310   :  { %1924 = vmatpush3.bf16.msra.mxu1 %v2005_v1 }
 0x313   :  { %1926 = vmatmul.mubr.bf16.vlgmr.msra.gmra.mrb[0].mxu1 %v1768_v8 }
 0x3ce   :  { %v1887_v9 = vpop.f32.mrb[4].mxu0 }
 0x3cf   :  { %v1112_v10 = vpop.f32.mrb[5].mxu0 }
 0x3d0   :  { %v1888_v12 = vpop.f32.mrb[6].mxu0 }
 0x3d1   :  { %v1115_v35 = vpop.f32.mrb[7].mxu0 }
 0x3e6   :  { %v1927_v13 = vpop.f32.mrb[0].mxu1 }
 0x3e7   :  { %v2522_v14 = vadd.f32 %v1927_v13, %v1887_v9  ;;  %v1363_v15 = vpop.f32.mrb[1].mxu1 }
 0x3e8   :  { %v2524_v16 = vadd.f32 %v1363_v15, %v1112_v10  ;;  %v1928_v17 = vpop.f32.mrb[2].mxu1 }
 0x3e9   :  { %v2526_v18 = vadd.f32 %v1928_v17, %v1888_v12  ;;  %v1366_v19 = vpop.f32.mrb[3].mxu1  ;;  %v1393_v22 = vmul.f32 %v2522_v14, %v2522_v14 }
 0x3ea   :  { %v2528_v47 = vadd.f32 %v1366_v19, %v1115_v35  ;;  %v1391_v43 = vmul.f32 %v2524_v16, %v2524_v16 }
 0x3eb   :  { %v1394_v25 = vmul.f32 %v2526_v18, %v2526_v18 }
 0x3ec   :  { %v1382_v20 = vadd.f32 %v2528_v47, %v2524_v16  ;;  %v1392_v21 = vmul.f32 %v2528_v47, %v2528_v47 }
 0x3ee   :  { %v1383_v23 = vadd.f32 %v2522_v14, %v1382_v20  ;;  %v1395_v24 = vadd.f32 %v1392_v21, %v1391_v43 }
 0x3f0   :  { %v1384_v26 = vadd.f32 %v2526_v18, %v1383_v23  ;;  %v1396_v27 = vadd.f32 %v1395_v24, %v1393_v22 }
 0x3f2   :  { %v1385_v28 = vrot.slane %v1384_v26, 4  ;;  %v1397_v29 = vadd.f32 %v1396_v27, %v1394_v25 }
 0x3f4   :  { %v1386_v30 = vadd.f32 %v1385_v28, %v1384_v26  ;;  %v1398_v60 = vrot.slane %v1397_v29, 4 }
 0x3f6   :  { %v1387_v32 = vrot.slane %v1386_v30, 2  ;;  %v1399_v33 = vadd.f32 %v1398_v60, %v1397_v29 }
 0x3f8   :  { %v1388_v62 = vadd.f32 %v1387_v32, %v1386_v30  ;;  %v1400_v36 = vrot.slane %v1399_v33, 2 }
 0x3fa   :  { %v1389_v59 = vrot.slane %v1388_v62, 1  ;;  %v1401_v38 = vadd.f32 %v1400_v36, %v1399_v33 }
 0x3fc   :  { %v1390_v61 = vadd.f32 %v1389_v59, %v1388_v62  ;;  %v1402_v39 = vrot.slane %v1401_v38, 1 }
 0x3fe   :  { %v1403_v40 = vadd.f32 %v1402_v39, %v1401_v38  ;;  %1407 = vrot.lane.b32.xlu0 %v1390_v61, %s2112_s12 }
 0x400   :  { %1412 = vrot.lane.b32.xlu1 %v1403_v40, %s2112_s12 }
 0x402   :  { %1416 = vrot.lane.b32.xlu0 %v1390_v61, %s2111_s4 }
 0x404   :  { %1420 = vrot.lane.b32.xlu1 %v1403_v40, %s2111_s4 }
 0x406   :  { %1424 = vrot.lane.b32.xlu0 %v1390_v61, %s2113_s18 }
 0x408   :  { %1428 = vrot.lane.b32.xlu1 %v1403_v40, %s2113_s18 }
 0x40a   :  { %1432 = vrot.lane.b32.xlu0 %v1390_v61, %s2114_s19 }
 0x40c   :  { %1436 = vrot.lane.b32.xlu1 %v1403_v40, %s2114_s19 }
 0x40e   :  { %1440 = vrot.lane.b32.xlu0 %v1390_v61, %s2115_s20 }
 0x410   :  { %1444 = vrot.lane.b32.xlu1 %v1403_v40, %s2115_s20 }
 0x412   :  { %1448 = vrot.lane.b32.xlu0 %v1390_v61, %s2116_s21 }
 0x414   :  { %1452 = vrot.lane.b32.xlu1 %v1403_v40, %s2116_s21 }
 0x416   :  { %1456 = vrot.lane.b32.xlu0 %v1390_v61, %s2117_s22 }
 0x418   :  { %1460 = vrot.lane.b32.xlu1 %v1403_v40, %s2117_s22 }
 0x41a   :  { %1464 = vrot.lane.b32.xlu0 %v1390_v61, %s2105_s11 }
 0x41c   :  { %1468 = vrot.lane.b32.xlu1 %v1403_v40, %s2105_s11 }
 0x41e   :  { %1472 = vrot.lane.b32.xlu0 %v1390_v61, %s2118_s23 }
 0x420   :  { %1476 = vrot.lane.b32.xlu1 %v1403_v40, %s2118_s23 }
 0x422   :  { %1480 = vrot.lane.b32.xlu0 %v1390_v61, %s2119_s24 }
 0x424   :  { %1484 = vrot.lane.b32.xlu1 %v1403_v40, %s2119_s24 }
 0x426   :  { %1488 = vrot.lane.b32.xlu0 %v1390_v61, %s2120_s26 }
 0x428   :  { %1492 = vrot.lane.b32.xlu1 %v1403_v40, %s2120_s26 }
 0x42a   :  { %1496 = vrot.lane.b32.xlu0 %v1390_v61, %s2121_s27 }
 0x42c   :  { %1500 = vrot.lane.b32.xlu1 %v1403_v40, %s2121_s27 }
 0x42e   :  { %1504 = vrot.lane.b32.xlu0 %v1390_v61, %s2122_s28 }
 0x430   :  { %1508 = vrot.lane.b32.xlu1 %v1403_v40, %s2122_s28 }
 0x432   :  { %1512 = vrot.lane.b32.xlu0 %v1390_v61, %s2123_s29 }
 0x434   :  { %1516 = vrot.lane.b32.xlu1 %v1403_v40, %s2123_s29 }
 0x436   :  { %1520 = vrot.lane.b32.xlu0 %v1390_v61, %s2109_s25 }
 0x438   :  { %1524 = vrot.lane.b32.xlu1 %v1403_v40, %s2109_s25 }
 0x470   :  { %v1408_v42 = vpop.permute.xlu0 %1407 }
 0x471   :  { %v1410_v55 = vadd.f32 %v1408_v42, %v1390_v61 }
 0x472   :  { %v1413_v37 = vpop.permute.xlu1 %1412 }
 0x473   :  { %v1415_v57 = vadd.f32 %v1413_v37, %v1403_v40 }
 0x474   :  { %v1417_v31 = vpop.permute.xlu0 %1416 }
 0x475   :  { %v1419_v58 = vadd.f32 %v1417_v31, %v1410_v55 }
 0x476   :  { %v1421_v44 = vpop.permute.xlu1 %1420 }
 0x477   :  { %v1423_v0 = vadd.f32 %v1421_v44, %v1415_v57 }
 0x478   :  { %v1425_v45 = vpop.permute.xlu0 %1424 }
 0x479   :  { %v1427_v1 = vadd.f32 %v1425_v45, %v1419_v58 }
 0x47a   :  { %v1429_v46 = vpop.permute.xlu1 %1428 }
 0x47b   :  { %v1431_v2 = vadd.f32 %v1429_v46, %v1423_v0 }
 0x47c   :  { %v1433_v48 = vpop.permute.xlu0 %1432 }
 0x47d   :  { %v1435_v3 = vadd.f32 %v1433_v48, %v1427_v1  ;;  %v1532_v48 = vld [vmem:[%s2666_s5] sm:$0x1]  ;;  %s2124_s5 = smov [#allocation10]  }
 0x47e   :  { %v1437_v49 = vpop.permute.xlu1 %1436 }
 0x47f   :  { %v1439_v5 = vadd.f32 %v1437_v49, %v1431_v2 }
 0x480   :  { %v1441_v50 = vpop.permute.xlu0 %1440 }
 0x481   :  { %v1443_v7 = vadd.f32 %v1441_v50, %v1435_v3 }
 0x482   :  { %v1445_v51 = vpop.permute.xlu1 %1444 }
 0x483   :  { %v1447_v9 = vadd.f32 %v1445_v51, %v1439_v5  ;;  %v1536_v51 = vld [vmem:[%s2667_s6] sm:$0x1]  ;;  %s1698_s6 = sshll.u32 %s2124_s5, 4  ;;  %s1699_s6 = int_to_ptr.vmem [resolvable:$true] %s1698_s6 }
 0x484   :  { %v1449_v6 = vpop.permute.xlu0 %1448  ;;  %p2081_p11 = scmp.lt.s32.totalorder %s1699_s6, %s1699_s6 }
 0x485   :  { %v1451_v10 = vadd.f32 %v1449_v6, %v1443_v7 }
 0x486   :  { %v1453_v41 = vpop.permute.xlu1 %1452 }
 0x487   :  { %v1455_v35 = vadd.f32 %v1453_v41, %v1447_v9 }
 0x488   :  { %v1457_v52 = vpop.permute.xlu0 %1456 }
 0x489   :  { %v1459_v13 = vadd.f32 %v1457_v52, %v1451_v10 }
 0x48a   :  { %v1461_v53 = vpop.permute.xlu1 %1460 }
 0x48b   :  { %v1463_v17 = vadd.f32 %v1461_v53, %v1455_v35 }
 0x48c   :  { %v1465_v54 = vpop.permute.xlu0 %1464 }
 0x48d   :  { %v1467_v19 = vadd.f32 %v1465_v54, %v1459_v13 }
 0x48e   :  { %v1469_v56 = vpop.permute.xlu1 %1468 }
 0x48f   :  { %v1471_v20 = vadd.f32 %v1469_v56, %v1463_v17 }
 0x490   :  { %v1473_v63 = vpop.permute.xlu0 %1472 }
 0x491   :  { %v1475_v21 = vadd.f32 %v1473_v63, %v1467_v19 }
 0x492   :  { %v1477_v11 = vpop.permute.xlu1 %1476 }
 0x493   :  { %v1479_v23 = vadd.f32 %v1477_v11, %v1471_v20 }
 0x494   :  { %v1481_v4 = vpop.permute.xlu0 %1480 }
 0x495   :  { %v1483_v24 = vadd.f32 %v1481_v4, %v1475_v21 }
 0x496   :  { %v1485_v8 = vpop.permute.xlu1 %1484 }
 0x497   :  { %v1487_v26 = vadd.f32 %v1485_v8, %v1479_v23 }
 0x498   :  { %v1489_v12 = vpop.permute.xlu0 %1488 }
 0x499   :  { %v1491_v27 = vadd.f32 %v1489_v12, %v1483_v24 }
 0x49a   :  { %v1493_v15 = vpop.permute.xlu1 %1492 }
 0x49b   :  { %v1495_v29 = vadd.f32 %v1493_v15, %v1487_v26 }
 0x49c   :  { %v1497_v43 = vpop.permute.xlu0 %1496 }
 0x49d   :  { %v1499_v30 = vadd.f32 %v1497_v43, %v1491_v27 }
 0x49e   :  { %v1501_v22 = vpop.permute.xlu1 %1500 }
 0x49f   :  { %v1503_v32 = vadd.f32 %v1501_v22, %v1495_v29 }
 0x4a0   :  { %v1505_v25 = vpop.permute.xlu0 %1504 }
 0x4a1   :  { %v1507_v33 = vadd.f32 %v1505_v25, %v1499_v30 }
 0x4a2   :  { %v1509_v28 = vpop.permute.xlu1 %1508 }
 0x4a3   :  { %v1511_v36 = vadd.f32 %v1509_v28, %v1503_v32 }
 0x4a4   :  { %v1513_v60 = vpop.permute.xlu0 %1512 }
 0x4a5   :  { %v1515_v59 = vadd.f32 %v1513_v60, %v1507_v33 }
 0x4a6   :  { %v1517_v62 = vpop.permute.xlu1 %1516 }
 0x4a7   :  { %v1519_v61 = vadd.f32 %v1517_v62, %v1511_v36 }
 0x4a8   :  { %v1521_v38 = vpop.permute.xlu0 %1520 }
 0x4a9   :  { %v1523_v39 = vadd.f32 %v1521_v38, %v1515_v59 }
 0x4aa   :  { %v1525_v40 = vpop.permute.xlu1 %1524 }
 0x4ab   :  { %v1528_v42 = vmul.f32 0.001953125, %v1523_v39  ;;  %v1527_v37 = vadd.f32 %v1525_v40, %v1519_v61 }
 0x4ad   :  { %v1530_v31 = vmul.f32 %v1528_v42, %v1528_v42  ;;  %v1529_v44 = vmul.f32 0.001953125, %v1527_v37 }
 0x4af   :  { %v1531_v45 = vsub.f32 %v1529_v44, %v1530_v31 }
 0x4b1   :  { %v1533_v46 = vadd.f32 1e-05, %v1531_v45 }
 0x4b3   :  { %2008 = vrsqrt.f32 %v1533_v46 }
 0x4bd   :  { %v2009_v49 = vpop.eup %2008 }
 0x4be   :  { %v1535_v50 = vmul.f32 %v2009_v49, %v1532_v48 }
 0x4c0   :  { %v1537_v6 = vmul.f32 %v1535_v50, %v1528_v42  ;;  %v1543_v41 = vrot.slane %v1535_v50, %v2370_v34 }
 0x4c2   :  { %v1538_v52 = vsub.f32 %v1536_v51, %v1537_v6  ;;  %1547 = vrot.lane.b32.xlu1 %v1543_v41, %s2123_s29  ;;  %1544 = vrot.lane.b32.xlu0 %v1543_v41, %s2109_s25 }
 0x4c4   :  { %v1608_v53 = vrot.slane %v1538_v52, %v2370_v34 }
 0x4c6   :  { %1550 = vrot.lane.b32.xlu0 %v1543_v41, %s2122_s28  ;;  %1609 = vrot.lane.b32.xlu1 %v1608_v53, %s2109_s25 }
 0x4ca   :  { %1553 = vrot.lane.b32.xlu0 %v1543_v41, %s2121_s27  ;;  %1612 = vrot.lane.b32.xlu1 %v1608_v53, %s2123_s29 }
 0x4ce   :  { %1556 = vrot.lane.b32.xlu0 %v1543_v41, %s2120_s26  ;;  %1615 = vrot.lane.b32.xlu1 %v1608_v53, %s2122_s28 }
 0x4d2   :  { %1559 = vrot.lane.b32.xlu0 %v1543_v41, %s2119_s24  ;;  %1618 = vrot.lane.b32.xlu1 %v1608_v53, %s2121_s27 }
 0x4d6   :  { %1562 = vrot.lane.b32.xlu0 %v1543_v41, %s2118_s23  ;;  %1621 = vrot.lane.b32.xlu1 %v1608_v53, %s2120_s26 }
 0x4da   :  { %1565 = vrot.lane.b32.xlu0 %v1543_v41, %s2105_s11  ;;  %1624 = vrot.lane.b32.xlu1 %v1608_v53, %s2119_s24 }
 0x4de   :  { %1568 = vrot.lane.b32.xlu0 %v1543_v41, %s2117_s22  ;;  %1627 = vrot.lane.b32.xlu1 %v1608_v53, %s2118_s23 }
 0x4e2   :  { %1571 = vrot.lane.b32.xlu0 %v1543_v41, %s2116_s21  ;;  %1630 = vrot.lane.b32.xlu1 %v1608_v53, %s2105_s11  ;;  %s2076_s11 = scalar_lea.vmem %s1699_s6, 512 }
 0x4e3   :  { %p2077_p10 = scmp.ne.s32.totalorder %s1699_s6, %s2076_s11  ;;  %p2082_p12 = scmp.lt.s32.totalorder %s2076_s11, %s2076_s11 }
 0x4e5   :  { %p2083_p13 = por %p2082_p12, %p2081_p11 }
 0x4e6   :  { %1574 = vrot.lane.b32.xlu0 %v1543_v41, %s2115_s20  ;;  %1633 = vrot.lane.b32.xlu1 %v1608_v53, %s2117_s22 }
 0x4e7   :  { %p2084_p0 = pnand %p2083_p13, %p2077_p10 }
 0x4ea   :  { %1577 = vrot.lane.b32.xlu0 %v1543_v41, %s2114_s19  ;;  %1636 = vrot.lane.b32.xlu1 %v1608_v53, %s2116_s21 }
 0x4ee   :  { %1580 = vrot.lane.b32.xlu0 %v1543_v41, %s2113_s18  ;;  %1639 = vrot.lane.b32.xlu1 %v1608_v53, %s2115_s20 }
 0x4f2   :  { %1583 = vrot.lane.b32.xlu0 %v1543_v41, %s2111_s4  ;;  %1642 = vrot.lane.b32.xlu1 %v1608_v53, %s2114_s19 }
 0x4f6   :  { %1586 = vrot.lane.b32.xlu0 %v1543_v41, %s2112_s12  ;;  %1645 = vrot.lane.b32.xlu1 %v1608_v53, %s2113_s18 }
 0x4fa   :  { %1648 = vrot.lane.b32.xlu0 %v1608_v53, %s2111_s4  ;;  %1651 = vrot.lane.b32.xlu1 %v1608_v53, %s2112_s12 }
 0x534   :  { %v1548_v54 = vpop.permute.xlu1 %1547  ;;  %v1545_v55 = vpop.permute.xlu0 %1544 }
 0x535   :  { %v1589_v15 = vsel %vm2693_vm3, %v1535_v50, %v1545_v55 }
 0x536   :  { %v1590_v17 = vsel %vm740_vm5, %v1589_v15, %v1548_v54 }
 0x538   :  { %v1551_v56 = vpop.permute.xlu0 %1550  ;;  %v1610_v57 = vpop.permute.xlu1 %1609 }
 0x539   :  { %v1591_v20 = vsel %vm2694_vm8, %v1590_v17, %v1551_v56  ;;  %v1654_v23 = vsel %vm2696_vm15, %v1538_v52, %v1610_v57 }
 0x53c   :  { %v1554_v58 = vpop.permute.xlu0 %1553  ;;  %v1613_v63 = vpop.permute.xlu1 %1612 }
 0x53d   :  { %v1592_v21 = vsel %vm2695_vm11, %v1591_v20, %v1554_v58  ;;  %v1655_v27 = vsel %vm740_vm5, %v1654_v23, %v1613_v63  ;;  %vm2699_vm5 = vcmask 850944  }
 0x540   :  { %v1557_v0 = vpop.permute.xlu0 %1556  ;;  %v1616_v1 = vpop.permute.xlu1 %1615 }
 0x541   :  { %v1593_v22 = vsel %vm746_vm9, %v1592_v21, %v1557_v0  ;;  %v1656_v29 = vsel %vm2697_vm2, %v1655_v27, %v1616_v1 }
 0x544   :  { %v1560_v11 = vpop.permute.xlu0 %1559  ;;  %v1619_v2 = vpop.permute.xlu1 %1618 }
 0x545   :  { %v1594_v24 = vsel %vm748_vm10, %v1593_v22, %v1560_v11  ;;  %v1657_v60 = vsel %vm2698_vm6, %v1656_v29, %v1619_v2 }
 0x548   :  { %v1563_v3 = vpop.permute.xlu0 %1562  ;;  %v1622_v4 = vpop.permute.xlu1 %1621 }
 0x549   :  { %v1595_v28 = vsel %vm750_vm13, %v1594_v24, %v1563_v3  ;;  %v1658_v33 = vsel %vm746_vm9, %v1657_v60, %v1622_v4  ;;  %vm2701_vm9 = vcmask 982016  }
 0x54c   :  { %v1566_v5 = vpop.permute.xlu0 %1565  ;;  %v1625_v7 = vpop.permute.xlu1 %1624 }
 0x54d   :  { %v1596_v30 = vsel %vm265_vm12, %v1595_v28, %v1566_v5  ;;  %v1659_v38 = vsel %vm748_vm10, %v1658_v33, %v1625_v7  ;;  %vm2702_vm10 = vmmov %vm2699_vm5 }
 0x550   :  { %v1569_v8 = vpop.permute.xlu0 %1568  ;;  %v1628_v9 = vpop.permute.xlu1 %1627 }
 0x551   :  { %v1597_v32 = vsel %vm753_vm14, %v1596_v30, %v1569_v8  ;;  %v1660_v39 = vsel %vm750_vm13, %v1659_v38, %v1628_v9  ;;  %vm2704_vm13 = vmmov %vm2701_vm9 }
 0x554   :  { %v1572_v10 = vpop.permute.xlu0 %1571  ;;  %v1631_v12 = vpop.permute.xlu1 %1630 }
 0x555   :  { %v1598_v62 = vsel %vm755_vm0, %v1597_v32, %v1572_v10  ;;  %v1661_v42 = vsel %vm265_vm12, %v1660_v39, %v1631_v12  ;;  %vm2703_vm12 = vmmov %vm2700_vm7 }
 0x558   :  { %v1575_v35 = vpop.permute.xlu0 %1574  ;;  %v1634_v13 = vpop.permute.xlu1 %1633 }
 0x559   :  { %v1599_v61 = vsel %vm757_vm4, %v1598_v62, %v1575_v35  ;;  %v1662_v31 = vsel %vm753_vm14, %v1661_v42, %v1634_v13 }
 0x55c   :  { %v1578_v19 = vpop.permute.xlu0 %1577  ;;  %v1637_v43 = vpop.permute.xlu1 %1636 }
 0x55d   :  { %v1600_v40 = vsel %vm759_vm1, %v1599_v61, %v1578_v19  ;;  %v1663_v48 = vsel %vm755_vm0, %v1662_v31, %v1637_v43 }
 0x560   :  { %v1581_v25 = vpop.permute.xlu0 %1580  ;;  %v1640_v26 = vpop.permute.xlu1 %1639 }
 0x561   :  { %v1601_v37 = vsel %vm2699_vm5, %v1600_v40, %v1581_v25  ;;  %v1664_v50 = vsel %vm757_vm4, %v1663_v48, %v1640_v26 }
 0x564   :  { %v1584_v36 = vpop.permute.xlu0 %1583  ;;  %v1643_v59 = vpop.permute.xlu1 %1642 }
 0x565   :  { %v1602_v44 = vsel %vm2700_vm7, %v1601_v37, %v1584_v36  ;;  %v1665_v6 = vsel %vm759_vm1, %v1664_v50, %v1643_v59 }
 0x568   :  { %v1587_v45 = vpop.permute.xlu0 %1586  ;;  %v1646_v46 = vpop.permute.xlu1 %1645 }
 0x569   :  { %v1603_v49 = vsel %vm2701_vm9, %v1602_v44, %v1587_v45  ;;  %v1666_v41 = vsel %vm2702_vm10, %v1665_v6, %v1646_v46 }
 0x56a   :  { %v1672_v51 = vrot.slane %v1603_v49, %v2370_v34 }
 0x56c   :  { %v1649_v52 = vpop.permute.xlu0 %1648  ;;  %v1652_v53 = vpop.permute.xlu1 %1651  ;;  %v1673_v55 = vmul.f32 %v2524_v16, %v1672_v51  ;;  %v1674_v57 = vmul.f32 %v2528_v47, %v1672_v51  ;;  %v1675_v58 = vmul.f32 %v2522_v14, %v1672_v51  ;;  %v1676_v63 = vmul.f32 %v2526_v18, %v1672_v51 }
 0x56d   :  { %v1667_v54 = vsel %vm2703_vm12, %v1666_v41, %v1649_v52 }
 0x56e   :  { %v1668_v56 = vsel %vm2704_vm13, %v1667_v54, %v1652_v53 }
 0x56f   :  { %v1680_v0 = vrot.slane %v1668_v56, %v2370_v34 }
 0x571   :  { %v1681_v1 = vadd.f32 %v1680_v0, %v1673_v55  ;;  %v1682_v11 = vadd.f32 %v1680_v0, %v1674_v57  ;;  %v1683_v2 = vadd.f32 %v1680_v0, %v1675_v58  ;;  %v1684_v3 = vadd.f32 %v1680_v0, %v1676_v63 }
 0x573   :  { %v1685_v4 = vmax.f32 %v1681_v1, 0.0  ;;  %v1686_v5 = vmax.f32 %v1682_v11, 0.0  ;;  %v1687_v7 = vmax.f32 %v1683_v2, 0.0  ;;  %v1688_v16 = vmax.f32 %v1684_v3, 0.0 }
 0x575   :  { %1689 = vst [vmem:[#allocation10] sm:$0xff] %v1685_v4  ;;  %1690 = vst [vmem:[#allocation10 + $0x8] sm:$0xff] %v1686_v5 }
 0x576   :  { %1691 = vst [vmem:[#allocation10 + $0x10] sm:$0xff] %v1687_v7  ;;  %1692 = vst [vmem:[#allocation10 + $0x18] sm:$0xff] %v1688_v16 }
 0x577   :  { %2087 = shalt.err (!%p2084_p0)
}
 0x578   :  { %s2088_s0 = scalar_lea.hbm %s2668_s7, 512 }
 0x579   :  { %p2089_p1 = scmp.ne.s32.totalorder %s2668_s7, %s2088_s0  ;;  %p2092_p2 = scmp.lt.u32.totalorder %s2088_s0, %s2668_s7 }
 0x57b   :  { %p2094_p3 = pnand %p2092_p2, %p2089_p1 }
 0x57d   :  { %2097 = shalt.err (!%p2094_p3)
}
 0x57e   :  { %1704 = dma.vmem_to_hbm [thread:$0]  %s1699_s6, 512, %s2668_s7, [#allocation6], %s2108_s1, %s2108_s1, %s2109_s25  }
 0x57f   :  { %2102 = dma.done.wait [#allocation6], 512  }
 0x580   :  { %2103 = vsyncadd [#allocation6], 4294966784 }
 0x581   :  { %1708 = vsyncpa [#allocation5], 1 }
 0x582   :  { %1709 = vsyncpa [#allocation8], 1 }
 0x583   :  { %1710 = vsyncpa [#allocation6], 1 }

</bundles_post_ra>
